<compile_context>
chip_gen: v7x
topology: tpu7x:2x2x1
jax: 0.10.0
libtpu: 0.0.40
codegen_flags: <defaults>
</compile_context>

<pallas_src>
import functools

import jax
import jax.numpy as jnp
from jax.experimental import pallas as pl
from jax.experimental.pallas import tpu as pltpu


# ----------------------------------------------------------------------------
# Trace-time tables
# ----------------------------------------------------------------------------

def _tap_matrix(h, w, weight):
    """Banded (H*W, H*W) matrix T such that  conv2d_3x3_pad1(img) = img_flat @ T.

    Column j of T holds the 3x3 weights at the flat source positions feeding
    output position j; zero-padding border positions are simply absent, so no
    runtime masking is needed.  Built once at trace time (tiny)."""
    hw = h * w
    j = jnp.arange(hw, dtype=jnp.int32)
    xcol = j % w
    t = jnp.zeros((hw, hw), dtype=jnp.float32)
    for dy in range(3):
        for dx in range(3):
            s = (dy - 1) * w + (dx - 1)          # flat-index offset of this tap
            src = j + s
            valid = (src >= 0) & (src < hw)      # top / bottom padding rows
            if dx == 0:                          # left padding column
                valid = valid & (xcol != 0)
            elif dx == 2:                        # right padding column
                valid = valid & (xcol != w - 1)
            contrib = jnp.where(valid, weight[dy, dx].astype(jnp.float32), 0.0)
            t = t.at[jnp.where(valid, src, 0), j].add(contrib)
    return t


def _tap_coeffs(h, w, weight, bias):
    """Per-tap coefficient rows for the roll-based path (large H*W).

    Row t (t = 3*dy + dx) holds weight[dy, dx] wherever the shifted source
    pixel is inside the image and 0 where the conv's zero padding applies.
    Row 9 holds the bias.  Returns (coeff[10, H*W] f32, 9 static flat shifts)."""
    hw = h * w
    i = jnp.arange(hw, dtype=jnp.int32)
    xcol = i % w
    rows, shifts = [], []
    for dy in range(3):
        for dx in range(3):
            s = (dy - 1) * w + (dx - 1)
            shifts.append(s)
            valid = (i + s >= 0) & (i + s < hw)
            if dx == 0:
                valid = valid & (xcol != 0)
            elif dx == 2:
                valid = valid & (xcol != w - 1)
            rows.append(valid.astype(jnp.float32) * weight[dy, dx])
    rows.append(jnp.broadcast_to(jnp.asarray(bias, jnp.float32), (hw,)))
    return jnp.stack(rows, axis=0), tuple(shifts)


# ----------------------------------------------------------------------------
# Kernels
# ----------------------------------------------------------------------------

def _dwconv_mxu_kernel(x_ref, tap_ref, bias_ref, o_ref):
    # x_ref:    (rows, HW)  flattened single-channel images (lane-dense)
    # tap_ref:  (HW, HW)    banded tap matrix, border masks folded in
    # bias_ref: (1, HW)     broadcast bias row
    # o_ref:    (rows, HW)
    x = x_ref[...]
    if x.dtype != jnp.float32:
        x = x.astype(jnp.float32)
    acc = jnp.dot(x, tap_ref[...],
                  preferred_element_type=jnp.float32,
                  precision=jax.lax.Precision.HIGHEST)
    o_ref[...] = (acc + bias_ref[...]).astype(o_ref.dtype)


def _dwconv_roll_kernel(x_ref, coeff_ref, o_ref, *, hw, shifts):
    # x_ref:     (rows, HW)   flattened single-channel images
    # coeff_ref: (10, HW)     rows 0..8 = border-masked tap weights, row 9 = bias
    # o_ref:     (rows, HW)
    # NOTE: wrapped lanes rely on 0 * value == 0; Inf/NaN inputs can leak NaN
    # into adjacent border outputs (edge case, matches previous behaviour).
    x = x_ref[...]
    if x.dtype != jnp.float32:
        x = x.astype(jnp.float32)
    cf = coeff_ref[...]
    # Centre tap + bias initialise the accumulator (no zeros materialisation).
    acc = x * cf[4:5, :] + cf[9:10, :]
    for t, s in enumerate(shifts):               # static 9-tap unroll
        if t == 4:
            continue
        shifted = x if s == 0 else pltpu.roll(x, shift=(-s) % hw, axis=1)
        acc = acc + shifted * cf[t:t + 1, :]     # masked weight zeros wrapped lanes
    o_ref[...] = acc.astype(o_ref.dtype)


# ----------------------------------------------------------------------------
# Block-size selection
# ----------------------------------------------------------------------------

def _vmem_limit_bytes():
    try:
        phys = int(pltpu.get_tpu_info().vmem_capacity_bytes)
    except Exception:
        phys = 64 * 1024 * 1024          # conservative default (v7x per-TC VMEM)
    return min(phys * 3 // 4, 96 * 1024 * 1024)   # 48 MiB on v7x, 96 MiB on v5e/v6e


def _round_up(x, mult):
    return ((x + mult - 1) // mult) * mult


def _pick_rows(m, hw, in_item, out_item, vmem_limit_bytes):
    """Images (rows) per grid step; ragged last block is allowed."""
    mult = max(8, 32 // max(1, in_item))         # 8 f32 / 16 bf16 / 32 int8 sublanes
    # Small-problem fast path: one full-extent block; splitting a KB-scale
    # problem only adds ~0.35 us per-step pipeline overhead.
    if m * hw * (in_item + out_item) <= 2 * 1024 * 1024:
        return m
    # Per-row VMEM working set: double-buffered input + output blocks plus
    # ~4x f32 in-kernel temporaries (upcast, accumulator, cast staging).
    per_row = hw * (2 * in_item + 2 * out_item + 4 * 4)
    budget = vmem_limit_bytes // 2               # leave headroom for tables/scratch
    rows = max(mult, (budget // per_row) // mult * mult)
    # Keep the raw input tile in the multi-MiB roofline sweet spot; smaller
    # cap on 64-MiB-VMEM parts (v7x).
    tile_cap = 2 * 1024 * 1024 if vmem_limit_bytes <= 48 * 1024 * 1024 else 4 * 1024 * 1024
    rows = min(rows, max(mult, (tile_cap // (hw * in_item)) // mult * mult))
    if rows >= m:
        return m
    # Prefer an even number of grid steps (balanced megacore sharding on v7x).
    steps = -(-m // rows)
    if steps % 2 == 1:
        alt = _round_up(-(-m // (steps + 1)), mult)
        if mult <= alt < m:
            rows = alt
    return rows


# ----------------------------------------------------------------------------
# Public entry point
# ----------------------------------------------------------------------------

@jax.jit
def depthwise_clipseg_conv(x, weight, bias):
    """Pallas equivalent of depthwise_clipseg_conv().forward(x).

    x:      (N, C, H, W) NCHW input
    weight: (3, 3)       the shared Conv2d(1, 1, 3, padding=1) kernel
    bias:   ()           its bias
    """
    n, c, h, w = x.shape
    m, hw = n * c, h * w
    out_dtype = x.dtype
    in_item = jnp.dtype(x.dtype).itemsize
    out_item = jnp.dtype(out_dtype).itemsize

    x_flat = x.reshape(m, hw)                    # free, contiguous reshape
    vmem_limit = _vmem_limit_bytes()
    rows = _pick_rows(m, hw, in_item, out_item, vmem_limit)
    grid = (pl.cdiv(m, rows),)                   # ragged last block is legal
    cparams = pltpu.CompilerParams(
        dimension_semantics=("parallel",),
        vmem_limit_bytes=vmem_limit,
    )

    if hw <= 1024:
        # --- MXU path: one (rows, HW) x (HW, HW) matmul per step ------------
        tap = _tap_matrix(h, w, weight.astype(jnp.float32))
        bias_row = jnp.full((1, hw), bias, dtype=jnp.float32)
        out_flat = pl.pallas_call(
            _dwconv_mxu_kernel,
            out_shape=jax.ShapeDtypeStruct((m, hw), out_dtype),
            grid_spec=pltpu.PrefetchScalarGridSpec(
                num_scalar_prefetch=0,
                grid=grid,
                in_specs=[
                    pl.BlockSpec((rows, hw), lambda i: (i, 0)),
                    pl.BlockSpec((hw, hw), lambda i: (0, 0)),   # constant tap table
                    pl.BlockSpec((1, hw), lambda i: (0, 0)),    # constant bias row
                ],
                out_specs=pl.BlockSpec((rows, hw), lambda i: (i, 0)),
            ),
            compiler_params=cparams,
        )(x_flat, tap, bias_row)
    else:
        # --- Roll path for large H*W (tap table would not fit VMEM) --------
        coeff, shifts = _tap_coeffs(h, w, weight.astype(jnp.float32), bias)
        out_flat = pl.pallas_call(
            functools.partial(_dwconv_roll_kernel, hw=hw, shifts=shifts),
            out_shape=jax.ShapeDtypeStruct((m, hw), out_dtype),
            grid_spec=pltpu.PrefetchScalarGridSpec(
                num_scalar_prefetch=0,
                grid=grid,
                in_specs=[
                    pl.BlockSpec((rows, hw), lambda i: (i, 0)),
                    pl.BlockSpec((10, hw), lambda i: (0, 0)),   # constant coeff rows
                ],
                out_specs=pl.BlockSpec((rows, hw), lambda i: (i, 0)),
            ),
            compiler_params=cparams,
        )(x_flat, coeff)

    return out_flat.reshape(n, c, h, w)


# ----------------------------------------------------------------------------
# Pure-JAX reference (exact f32 elementwise arithmetic, no conv precision
# ambiguity) and self-test
# ----------------------------------------------------------------------------

def _reference(x, weight, bias):
    n, c, h, w = x.shape
    xf = x.astype(jnp.float32)
    xp = jnp.pad(xf, ((0, 0), (0, 0), (1, 1), (1, 1)))
    out = jnp.zeros_like(xf)
    for dy in range(3):
        for dx in range(3):
            out = out + weight[dy, dx].astype(jnp.float32) * xp[:, :, dy:dy + h, dx:dx + w]
    out = out + jnp.asarray(bias, jnp.float32)
    return out.astype(x.dtype)


if __name__ == "__main__":
    key = jax.random.PRNGKey(0)
    kx, kw, kb = jax.random.split(key, 3)
    # Small NCHW shape consistent with the module (shared 3x3 conv per channel).
    x = jax.random.normal(kx, (2, 8, 16, 16), dtype=jnp.float32)
    bound = 1.0 / 3.0   # PyTorch Conv2d(1,1,3) default init bound = 1/sqrt(9)
    weight = jax.random.uniform(kw, (3, 3), minval=-bound, maxval=bound, dtype=jnp.float32)
    bias = jax.random.uniform(kb, (), minval=-bound, maxval=bound, dtype=jnp.float32)

    y = depthwise_clipseg_conv(x, weight, bias)
    y = jax.block_until_ready(y)
    assert y.shape == x.shape, y.shape

    y_ref = _reference(x, weight, bias)
    err = float(jnp.max(jnp.abs(y.astype(jnp.float32) - y_ref.astype(jnp.float32))))
    assert err < 1e-4, err
    print("KERNEL_OK")
</pallas_src>

<mosaic_0001>
module attributes {stable_mosaic.version = 11 : i64} {
  func.func private @main(%arg0: i32) attributes {dimension_semantics = [#tpu.dimension_semantics<core_parallel>], iteration_bounds = array<i64: 2>, tpu.core_type = #tpu.core_type<sc_scalar_subcore>, window_params = []} {
    return
  }
}

module attributes {stable_mosaic.version = 11 : i64} {
  func.func private @main(%arg0: i32) attributes {dimension_semantics = [#tpu.dimension_semantics<core_parallel>], iteration_bounds = array<i64: 2>, tpu.core_type = #tpu.core_type<sc_scalar_subcore>, window_params = []} {
    return
  }
}

module attributes {stable_mosaic.version = 11 : i64} {
  func.func @_dwconv_mxu_kernel(%arg0: i32, %arg1: memref<16x256xf32, #tpu.memory_space<vmem>>, %arg2: memref<256x256xf32, #tpu.memory_space<vmem>>, %arg3: memref<1x256xf32, #tpu.memory_space<vmem>>, %arg4: memref<16x256xf32, #tpu.memory_space<vmem>>) attributes {dimension_semantics = [#tpu.dimension_semantics<parallel>], iteration_bounds = array<i64: 1>, scalar_prefetch = 0 : i64, scratch_operands = 0 : i64, tpu.core_type = #tpu.core_type<tc>, window_params = [{transform_indices = @transform_0, window_bounds = array<i64: 16, 256>}, {pipeline_mode = #tpu.pipeline_mode<synchronous>, transform_indices = @transform_1, window_bounds = array<i64: 256, 256>}, {pipeline_mode = #tpu.pipeline_mode<synchronous>, transform_indices = @transform_2, window_bounds = array<i64: 1, 256>}, {transform_indices = @transform_3, window_bounds = array<i64: 16, 256>}]} {
    %c0 = arith.constant 0 : index
    %c0_0 = arith.constant 0 : index
    %0 = vector.load %arg1[%c0, %c0_0] : memref<16x256xf32, #tpu.memory_space<vmem>>, vector<16x256xf32>
    %c0_1 = arith.constant 0 : index
    %c0_2 = arith.constant 0 : index
    %1 = vector.load %arg2[%c0_1, %c0_2] : memref<256x256xf32, #tpu.memory_space<vmem>>, vector<256x256xf32>
    %cst = arith.constant dense<0.000000e+00> : vector<16x256xf32>
    %2 = tpu.matmul %0, %1, %cst {dimension_numbers = #tpu.dot_dimension_numbers<[1], [0], [0], [1], [0, 0, 1, 1], [], []>, precision = #tpu.contract_precision<fp32>} : vector<16x256xf32>, vector<256x256xf32>, vector<16x256xf32> -> vector<16x256xf32>
    %c0_3 = arith.constant 0 : index
    %c0_4 = arith.constant 0 : index
    %3 = vector.load %arg3[%c0_3, %c0_4] : memref<1x256xf32, #tpu.memory_space<vmem>>, vector<1x256xf32>
    %4 = vector.broadcast %3 : vector<1x256xf32> to vector<16x256xf32>
    %5 = arith.addf %2, %4 : vector<16x256xf32>
    %c0_5 = arith.constant 0 : index
    %c0_6 = arith.constant 0 : index
    %6 = vector.load %arg4[%c0_5, %c0_6] : memref<16x256xf32, #tpu.memory_space<vmem>>, vector<16x256xf32>
    tpu.vector_store %arg4[%c0_5, %c0_6], %5 {strides = array<i32>} : memref<16x256xf32, #tpu.memory_space<vmem>>, vector<16x256xf32>,
    return
  }
  func.func @transform_0(%arg0: i32) -> (i32, i32) {
    %c0_i32 = arith.constant 0 : i32
    %c0_i32_0 = arith.constant 0 : i32
    return %arg0, %c0_i32 : i32, i32
  }
  func.func @transform_1(%arg0: i32) -> (i32, i32) {
    %c0_i32 = arith.constant 0 : i32
    %c0_i32_0 = arith.constant 0 : i32
    %c0_i32_1 = arith.constant 0 : i32
    return %c0_i32, %c0_i32_0 : i32, i32
  }
  func.func @transform_2(%arg0: i32) -> (i32, i32) {
    %c0_i32 = arith.constant 0 : i32
    %c0_i32_0 = arith.constant 0 : i32
    %c0_i32_1 = arith.constant 0 : i32
    return %c0_i32, %c0_i32_0 : i32, i32
  }
  func.func @transform_3(%arg0: i32) -> (i32, i32) {
    %c0_i32 = arith.constant 0 : i32
    %c0_i32_0 = arith.constant 0 : i32
    return %arg0, %c0_i32 : i32, i32
  }
}

</mosaic_0001>

<bundles_post_ra>
// kernel: depthwise_clipseg_conv.1
= control target key start
LH: loop header
LB: loop body
LE: loop exit
PB: predicated region body
PF: predicated region fallthrough
CT: control target
= control target key end

     0   :  { %8 = vsyncpa [#allocation3], 0  ;;  %s1898_s12 = smov [#allocation2]   ;;  %s2772_s0 = inlined_call_operand.vmem [shape: f32[16,256], index: 0, kind: input, shape index: {}]   ;;  %s2773_s1 = inlined_call_operand.hbm [shape: f32[256,256], index: 1, kind: input, shape index: {}]   ;;  %s2774_s2 = inlined_call_operand.vmem [shape: f32[1,256], index: 2, kind: input, shape index: {}]   ;;  %s2775_s3 = inlined_call_operand.vmem [shape: f32[16,256], index: 3, kind: output, shape index: {}]  }
   0x1   :  { %s16_s13 = sshll.u32 %s1898_s12, 4  ;;  %s1874_s16 = scalar_lea.hbm %s2773_s1, 8192  ;;  %s17_s13 = int_to_ptr.vmem [resolvable:$true] %s16_s13 }
   0x2   :  { %p1875_p0 = scmp.ne.s32.totalorder %s2773_s1, %s1874_s16  ;;  %p1878_p1 = scmp.lt.u32.totalorder %s1874_s16, %s2773_s1 }
   0x4   :  { %p1880_p2 = pnand %p1878_p1, %p1875_p0 }
   0x6   :  { %1883 = shalt.err (!%p1880_p2)
}
   0x7   :  { %s1884_s21 = scalar_lea.vmem %s17_s13, 8192  ;;  %p1889_p4 = scmp.lt.s32.totalorder %s17_s13, %s17_s13 }
   0x8   :  { %p1885_p3 = scmp.ne.s32.totalorder %s17_s13, %s1884_s21  ;;  %p1890_p5 = scmp.lt.s32.totalorder %s1884_s21, %s1884_s21 }
   0xa   :  { %p1891_p6 = por %p1890_p5, %p1889_p4 }
   0xc   :  { %p1892_p7 = pnand %p1891_p6, %p1885_p3 }
   0xe   :  { %1895 = shalt.err (!%p1892_p7)
}
   0xf   :  { %s1899_s22 = smov 256   ;;  %s1900_s23 = smov 16  }
  0x10   :  { %22 = dma.hbm_to_vmem [thread:$0]  %s2773_s1, 8192, %s17_s13, [#allocation3], %s1899_s22, %s1899_s22, %s1900_s23  }
  0x11   :  { %1896 = dma.done.wait [#allocation3], 8192  }
  0x12   :  { %1897 = vsyncadd [#allocation3], 4294959104  ;;  %v33_v0 = vld [vmem:[#allocation2 + $0x8] sm:$0xff]  ;;  %v35_v1 = vld [vmem:[#allocation2 + $0x18] sm:$0xff] }
  0x13   :  { %v32_v2 = vld [vmem:[#allocation2] sm:$0xff]  ;;  %v108_v3 = vand.u32 4294901760, %v33_v0  ;;  %v112_v4 = vand.u32 4294901760, %v35_v1  ;;  %v34_v5 = vld [vmem:[#allocation2 + $0x10] sm:$0xff]  ;;  %v37_v7 = vld [vmem:[#allocation2 + $0x28] sm:$0xff] }
  0x14   :  { %v110_v6 = vand.u32 4294901760, %v32_v2  ;;  %v39_v8 = vld [vmem:[#allocation2 + $0x38] sm:$0xff]  ;;  %v114_v9 = vand.u32 4294901760, %v34_v5  ;;  %v116_v10 = vand.u32 4294901760, %v37_v7  ;;  %v36_v12 = vld [vmem:[#allocation2 + $0x20] sm:$0xff]  ;;  %v38_v13 = vld [vmem:[#allocation2 + $0x30] sm:$0xff] }
  0x15   :  { %v120_v11 = vand.u32 4294901760, %v39_v8  ;;  %v41_v14 = vld [vmem:[#allocation2 + $0x48] sm:$0xff]  ;;  %v1933_v15 = vpack.c.bf16 %v112_v4, %v108_v3  ;;  %v43_v16 = vld [vmem:[#allocation2 + $0x58] sm:$0xff]  ;;  %v40_v17 = vld [vmem:[#allocation2 + $0x40] sm:$0xff]  ;;  %v118_v23 = vand.u32 4294901760, %v36_v12  ;;  %v122_v24 = vand.u32 4294901760, %v38_v13 }
  0x16   :  { %v42_v18 = vld [vmem:[#allocation2 + $0x50] sm:$0xff]  ;;  %v1935_v19 = vpack.c.bf16 %v114_v9, %v110_v6  ;;  %v45_v21 = vld [vmem:[#allocation2 + $0x68] sm:$0xff]  ;;  %v47_v22 = vld [vmem:[#allocation2 + $0x78] sm:$0xff]  ;;  %v124_v25 = vand.u32 4294901760, %v41_v14  ;;  %v1941_v26 = vsub.f32 %v33_v0, %v108_v3  ;;  %v128_v27 = vand.u32 4294901760, %v43_v16 }
  0x17   :  { %2915 = vst [vmem:[#allocation5_spill] sm:$0xff] %v1933_v15  ;;  %v1937_v20 = vpack.c.bf16 %v120_v11, %v116_v10  ;;  %1464 = vmatprep.subr.bf16.mxu1 %v1933_v15  ;;  %1656 = vmatprep.subr.bf16.mxu0 %v1933_v15  ;;  %v126_v28 = vand.u32 4294901760, %v40_v17  ;;  %v130_v29 = vand.u32 4294901760, %v42_v18  ;;  %v1945_v30 = vsub.f32 %v35_v1, %v112_v4  ;;  %v44_v34 = vld [vmem:[#allocation2 + $0x60] sm:$0xff]  ;;  %v46_v35 = vld [vmem:[#allocation2 + $0x70] sm:$0xff]  ;;  %v49_v36 = vld [vmem:[#allocation2 + $0x88] sm:$0xff] }
  0x18   :  { %2916 = vst [vmem:[#allocation6_spill] sm:$0xff] %v1935_v19  ;;  %2918 = vst [vmem:[#allocation8_spill] sm:$0xff] %v1941_v26  ;;  %1466 = vmatpush1.bf16.msra.mxu1 %v1935_v19  ;;  %1658 = vmatpush1.bf16.msra.mxu0 %v1935_v19  ;;  %v1949_v31 = vpack.c.bf16 %v122_v24, %v118_v23  ;;  %v132_v32 = vand.u32 4294901760, %v45_v21  ;;  %v136_v33 = vand.u32 4294901760, %v47_v22  ;;  %v51_v41 = vld [vmem:[#allocation2 + $0x98] sm:$0xff]  ;;  %v48_v42 = vld [vmem:[#allocation2 + $0x80] sm:$0xff] }
  0x19   :  { %2917 = vst [vmem:[#allocation7_spill] sm:$0xff] %v1937_v20  ;;  %2919 = vst [vmem:[#allocation9_spill] sm:$0xff] %v1945_v30  ;;  %1468 = vmatprep.subr.bf16.mxu1 %v1937_v20  ;;  %1660 = vmatprep.subr.bf16.mxu0 %v1937_v20  ;;  %v1951_v37 = vsub.f32 %v32_v2, %v110_v6  ;;  %v1953_v38 = vsub.f32 %v34_v5, %v114_v9  ;;  %v50_v43 = vld [vmem:[#allocation2 + $0x90] sm:$0xff]  ;;  %v134_v49 = vand.u32 4294901760, %v44_v34  ;;  %v53_v52 = vld [vmem:[#allocation2 + $0xa8] sm:$0xff] }
  0x1a   :  { %2920 = vst [vmem:[#allocation10_spill] sm:$0xff] %v1949_v31  ;;  %v1955_v39 = vsub.f32 %v37_v7, %v116_v10  ;;  %v1957_v40 = vpack.c.bf16 %v128_v27, %v124_v25  ;;  %v1959_v44 = vsub.f32 %v39_v8, %v120_v11  ;;  %v1961_v45 = vsub.f32 %v36_v12, %v118_v23  ;;  %v55_v57 = vld [vmem:[#allocation2 + $0xb8] sm:$0xff]  ;;  %v52_v62 = vld [vmem:[#allocation2 + $0xa0] sm:$0xff]  ;;  %v54_v3 = vld [vmem:[#allocation2 + $0xb0] sm:$0xff] }
  0x1b   :  { %2921 = vst [vmem:[#allocation11_spill] sm:$0xff] %v1951_v37  ;;  %2922 = vst [vmem:[#allocation12_spill] sm:$0xff] %v1953_v38  ;;  %v1963_v46 = vsub.f32 %v38_v13, %v122_v24  ;;  %v1965_v47 = vsub.f32 %v41_v14, %v124_v25  ;;  %v1969_v48 = vpack.c.bf16 %v130_v29, %v126_v28  ;;  %v138_v50 = vand.u32 4294901760, %v46_v35  ;;  %v57_v4 = vld [vmem:[#allocation2 + $0xc8] sm:$0xff]  ;;  %v59_v5 = vld [vmem:[#allocation2 + $0xd8] sm:$0xff] }
  0x1c   :  { %2923 = vst [vmem:[#allocation13_spill] sm:$0xff] %v1955_v39  ;;  %2924 = vst [vmem:[#allocation14_spill] sm:$0xff] %v1957_v40  ;;  %1470 = vmatpush1.bf16.msra.mxu1 %v1949_v31  ;;  %1662 = vmatpush1.bf16.msra.mxu0 %v1949_v31  ;;  %v140_v51 = vand.u32 4294901760, %v49_v36  ;;  %v1973_v53 = vpack.c.bf16 %v136_v33, %v132_v32  ;;  %v144_v54 = vand.u32 4294901760, %v51_v41  ;;  %v142_v55 = vand.u32 4294901760, %v48_v42  ;;  %v56_v10 = vld [vmem:[#allocation2 + $0xc0] sm:$0xff] }
  0x1d   :  { %2925 = vst [vmem:[#allocation15_spill] sm:$0xff] %v1959_v44  ;;  %2926 = vst [vmem:[#allocation16_spill] sm:$0xff] %v1969_v48  ;;  %1472 = vmatprep.subr.bf16.mxu1 %v1957_v40  ;;  %1664 = vmatprep.subr.bf16.mxu0 %v1957_v40  ;;  %v146_v56 = vand.u32 4294901760, %v50_v43  ;;  %v1975_v58 = vsub.f32 %v43_v16, %v128_v27  ;;  %v1977_v59 = vsub.f32 %v40_v17, %v126_v28  ;;  %v58_v11 = vld [vmem:[#allocation2 + $0xd0] sm:$0xff]  ;;  %v61_v16 = vld [vmem:[#allocation2 + $0xe8] sm:$0xff] }
  0x1e   :  { %2927 = vst [vmem:[#allocation17_spill] sm:$0xff] %v1973_v53  ;;  %v1979_v60 = vsub.f32 %v42_v18, %v130_v29  ;;  %v1981_v61 = vsub.f32 %v45_v21, %v132_v32  ;;  %v1983_v63 = vsub.f32 %v47_v22, %v136_v33  ;;  %v1985_v0 = vpack.c.bf16 %v138_v50, %v134_v49  ;;  %v63_v17 = vld [vmem:[#allocation2 + $0xf8] sm:$0xff]  ;;  %v60_v24 = vld [vmem:[#allocation2 + $0xe0] sm:$0xff]  ;;  %v62_v25 = vld [vmem:[#allocation2 + $0xf0] sm:$0xff] }
  0x1f   :  { %2928 = vst [vmem:[#allocation18_spill] sm:$0xff] %v1975_v58  ;;  %v1987_v1 = vsub.f32 %v44_v34, %v134_v49  ;;  %v148_v2 = vand.u32 4294901760, %v53_v52  ;;  %v1991_v6 = vsub.f32 %v46_v35, %v138_v50  ;;  %v1993_v7 = vpack.c.bf16 %v144_v54, %v140_v51  ;;  %v72_v20 = vld [vmem:[#allocation2 + $0x140] sm:$0xff]  ;;  %v74_v19 = vld [vmem:[#allocation2 + $0x150] sm:$0xff] }
  0x20   :  { %2929 = vst [vmem:[#allocation19_spill] sm:$0xff] %v1979_v60  ;;  %2930 = vst [vmem:[#allocation20_spill] sm:$0xff] %v1981_v61  ;;  %1474 = vmatpush1.bf16.msra.mxu1 %v1969_v48  ;;  %1666 = vmatpush1.bf16.msra.mxu0 %v1969_v48  ;;  %v1995_v8 = vsub.f32 %v49_v36, %v140_v51  ;;  %v152_v9 = vand.u32 4294901760, %v55_v57  ;;  %v1999_v12 = vsub.f32 %v51_v41, %v144_v54  ;;  %v65_v36 = vld [vmem:[#allocation2 + $0x108] sm:$0xff]  ;;  %v67_v41 = vld [vmem:[#allocation2 + $0x118] sm:$0xff] }
  0x21   :  { %2931 = vst [vmem:[#allocation21_spill] sm:$0xff] %v1983_v63  ;;  %2932 = vst [vmem:[#allocation22_spill] sm:$0xff] %v1985_v0  ;;  %1476 = vmatprep.subr.bf16.mxu1 %v1973_v53  ;;  %1668 = vmatprep.subr.bf16.mxu0 %v1973_v53  ;;  %v2001_v13 = vpack.c.bf16 %v146_v56, %v142_v55  ;;  %v2003_v14 = vsub.f32 %v48_v42, %v142_v55  ;;  %v150_v18 = vand.u32 4294901760, %v52_v62  ;;  %v64_v51 = vld [vmem:[#allocation2 + $0x100] sm:$0xff]  ;;  %v71_v53 = vld [vmem:[#allocation2 + $0x138] sm:$0xff] }
  0x22   :  { %2933 = vst [vmem:[#allocation23_spill] sm:$0xff] %v1987_v1  ;;  %2934 = vst [vmem:[#allocation24_spill] sm:$0xff] %v1991_v6  ;;  %v154_v21 = vand.u32 4294901760, %v54_v3  ;;  %v156_v22 = vand.u32 4294901760, %v57_v4  ;;  %v160_v23 = vand.u32 4294901760, %v59_v5  ;;  %v2005_v27 = vsub.f32 %v50_v43, %v146_v56 }
  0x23   :  { %2935 = vst [vmem:[#allocation25_spill] sm:$0xff] %v1993_v7  ;;  %2936 = vst [vmem:[#allocation26_spill] sm:$0xff] %v1995_v8  ;;  %v2007_v28 = vsub.f32 %v53_v52, %v148_v2  ;;  %v158_v29 = vand.u32 4294901760, %v56_v10  ;;  %v162_v32 = vand.u32 4294901760, %v58_v11  ;;  %v2011_v33 = vpack.c.bf16 %v152_v9, %v148_v2 }
  0x24   :  { %2937 = vst [vmem:[#allocation27_spill] sm:$0xff] %v1999_v12  ;;  %2938 = vst [vmem:[#allocation28_spill] sm:$0xff] %v2001_v13  ;;  %1478 = vmatpush1.bf16.msra.mxu1 %v1985_v0  ;;  %1670 = vmatpush1.bf16.msra.mxu0 %v1985_v0  ;;  %v2013_v34 = vsub.f32 %v55_v57, %v152_v9  ;;  %v2015_v35 = vsub.f32 %v52_v62, %v150_v18  ;;  %v164_v42 = vand.u32 4294901760, %v61_v16  ;;  %v66_v57 = vld [vmem:[#allocation2 + $0x110] sm:$0xff]  ;;  %v69_v0 = vld [vmem:[#allocation2 + $0x128] sm:$0xff] }
  0x25   :  { %2939 = vst [vmem:[#allocation29_spill] sm:$0xff] %v2003_v14  ;;  %2940 = vst [vmem:[#allocation30_spill] sm:$0xff] %v2005_v27  ;;  %1480 = vmatprep.subr.bf16.mxu1 %v1993_v7  ;;  %1672 = vmatprep.subr.bf16.mxu0 %v1993_v7  ;;  %v168_v43 = vand.u32 4294901760, %v63_v17  ;;  %v166_v49 = vand.u32 4294901760, %v60_v24  ;;  %v170_v50 = vand.u32 4294901760, %v62_v25  ;;  %v2019_v52 = vpack.c.bf16 %v154_v21, %v150_v18 }
  0x26   :  { %2941 = vst [vmem:[#allocation31_spill] sm:$0xff] %v2007_v28  ;;  %2942 = vst [vmem:[#allocation32_spill] sm:$0xff] %v2011_v33  ;;  %v2021_v54 = vsub.f32 %v54_v3, %v154_v21  ;;  %v2023_v55 = vpack.c.bf16 %v160_v23, %v156_v22  ;;  %v2025_v56 = vsub.f32 %v57_v4, %v156_v22  ;;  %v172_v9 = vand.u32 4294901760, %v65_v36  ;;  %v68_v22 = vld [vmem:[#allocation2 + $0x120] sm:$0xff] }
  0x27   :  { %2943 = vst [vmem:[#allocation33_spill] sm:$0xff] %v2013_v34  ;;  %2944 = vst [vmem:[#allocation34_spill] sm:$0xff] %v2015_v35  ;;  %v2027_v62 = vsub.f32 %v59_v5, %v160_v23  ;;  %v2029_v2 = vpack.c.bf16 %v162_v32, %v158_v29  ;;  %v176_v7 = vand.u32 4294901760, %v67_v41  ;;  %v2033_v18 = vsub.f32 %v56_v10, %v158_v29  ;;  %v70_v5 = vld [vmem:[#allocation2 + $0x130] sm:$0xff]  ;;  %v73_v10 = vld [vmem:[#allocation2 + $0x148] sm:$0xff] }
  0x28   :  { %2945 = vst [vmem:[#allocation35_spill] sm:$0xff] %v2019_v52  ;;  %2946 = vst [vmem:[#allocation36_spill] sm:$0xff] %v2021_v54  ;;  %1482 = vmatpush1.bf16.msra.mxu1 %v2001_v13  ;;  %1674 = vmatpush1.bf16.msra.mxu0 %v2001_v13  ;;  %v2035_v3 = vsub.f32 %v58_v11, %v162_v32  ;;  %v2037_v21 = vsub.f32 %v61_v16, %v164_v42  ;;  %v174_v4 = vand.u32 4294901760, %v64_v51  ;;  %v75_v29 = vld [vmem:[#allocation2 + $0x158] sm:$0xff] }
  0x29   :  { %2947 = vst [vmem:[#allocation37_spill] sm:$0xff] %v2023_v55  ;;  %2948 = vst [vmem:[#allocation38_spill] sm:$0xff] %v2025_v56  ;;  %1484 = vmatprep.subr.bf16.mxu1 %v2011_v33  ;;  %1676 = vmatprep.subr.bf16.mxu0 %v2011_v33  ;;  %v2041_v23 = vpack.c.bf16 %v168_v43, %v164_v42  ;;  %v2043_v48 = vsub.f32 %v63_v17, %v168_v43  ;;  %v178_v13 = vand.u32 4294901760, %v66_v57  ;;  %v77_v43 = vld [vmem:[#allocation2 + $0x168] sm:$0xff] }
  0x2a   :  { %2949 = vst [vmem:[#allocation39_spill] sm:$0xff] %v2027_v62  ;;  %2950 = vst [vmem:[#allocation40_spill] sm:$0xff] %v2029_v2  ;;  %v2045_v40 = vpack.c.bf16 %v170_v50, %v166_v49  ;;  %v2047_v11 = vsub.f32 %v60_v24, %v166_v49  ;;  %v2049_v16 = vsub.f32 %v62_v25, %v170_v50  ;;  %v180_v32 = vand.u32 4294901760, %v69_v0 }
  0x2b   :  { %2951 = vst [vmem:[#allocation41_spill] sm:$0xff] %v2033_v18  ;;  %2952 = vst [vmem:[#allocation42_spill] sm:$0xff] %v2035_v3  ;;  %v184_v31 = vand.u32 4294901760, %v71_v53  ;;  %v2051_v15 = vpack.c.bf16 %v176_v7, %v172_v9  ;;  %v2053_v33 = vsub.f32 %v65_v36, %v172_v9  ;;  %v182_v42 = vand.u32 4294901760, %v68_v22 }
  0x2c   :  { %2953 = vst [vmem:[#allocation43_spill] sm:$0xff] %v2037_v21  ;;  %2954 = vst [vmem:[#allocation44_spill] sm:$0xff] %v2041_v23  ;;  %v186_v17 = vand.u32 4294901760, %v70_v5  ;;  %1486 = vmatpush1.bf16.msra.mxu1 %v2019_v52  ;;  %1678 = vmatpush1.bf16.msra.mxu0 %v2019_v52  ;;  %v2057_v24 = vsub.f32 %v67_v41, %v176_v7  ;;  %v2059_v25 = vsub.f32 %v64_v51, %v174_v4  ;;  %v78_v21 = vld [vmem:[#allocation2 + $0x170] sm:$0xff]  ;;  %v81_v52 = vld [vmem:[#allocation2 + $0x188] sm:$0xff] }
  0x2d   :  { %2955 = vst [vmem:[#allocation45_spill] sm:$0xff] %v2043_v48  ;;  %2956 = vst [vmem:[#allocation46_spill] sm:$0xff] %v2045_v40  ;;  %v79_v48 = vld [vmem:[#allocation2 + $0x178] sm:$0xff]  ;;  %v188_v49 = vand.u32 4294901760, %v73_v10  ;;  %v192_v50 = vand.u32 4294901760, %v75_v29  ;;  %1488 = vmatprep.subr.bf16.mxu1 %v2023_v55  ;;  %1680 = vmatprep.subr.bf16.mxu0 %v2023_v55  ;;  %v2063_v36 = vpack.c.bf16 %v178_v13, %v174_v4  ;;  %v196_v41 = vand.u32 4294901760, %v77_v43 }
  0x2e   :  { %2957 = vst [vmem:[#allocation47_spill] sm:$0xff] %v2047_v11  ;;  %2958 = vst [vmem:[#allocation48_spill] sm:$0xff] %v2049_v16  ;;  %v2065_v9 = vsub.f32 %v66_v57, %v178_v13  ;;  %v194_v16 = vand.u32 4294901760, %v74_v19  ;;  %v76_v11 = vld [vmem:[#allocation2 + $0x160] sm:$0xff]  ;;  %v2067_v3 = vpack.c.bf16 %v184_v31, %v180_v32  ;;  %v2069_v7 = vsub.f32 %v69_v0, %v180_v32 }
  0x2f   :  { %2959 = vst [vmem:[#allocation49_spill] sm:$0xff] %v2051_v15  ;;  %2960 = vst [vmem:[#allocation50_spill] sm:$0xff] %v2053_v33  ;;  %v190_v33 = vand.u32 4294901760, %v72_v20  ;;  %v200_v51 = vand.u32 4294901760, %v79_v48  ;;  %v2073_v18 = vpack.c.bf16 %v186_v17, %v182_v42  ;;  %v2075_v4 = vsub.f32 %v68_v22, %v182_v42  ;;  %v80_v57 = vld [vmem:[#allocation2 + $0x180] sm:$0xff] }
  0x30   :  { %2961 = vst [vmem:[#allocation51_spill] sm:$0xff] %v2057_v24  ;;  %2962 = vst [vmem:[#allocation52_spill] sm:$0xff] %v2059_v25  ;;  %v83_v25 = vld [vmem:[#allocation2 + $0x198] sm:$0xff]  ;;  %v2071_v24 = vsub.f32 %v71_v53, %v184_v31  ;;  %v2077_v13 = vsub.f32 %v70_v5, %v186_v17  ;;  %1490 = vmatpush1.bf16.msra.mxu1 %v2029_v2  ;;  %1682 = vmatpush1.bf16.msra.mxu0 %v2029_v2  ;;  %v198_v32 = vand.u32 4294901760, %v76_v11  ;;  %v85_v31 = vld [vmem:[#allocation2 + $0x1a8] sm:$0xff] }
  0x31   :  { %2963 = vst [vmem:[#allocation53_spill] sm:$0xff] %v2063_v36  ;;  %2964 = vst [vmem:[#allocation54_spill] sm:$0xff] %v2065_v9  ;;  %v2081_v55 = vpack.c.bf16 %v192_v50, %v188_v49  ;;  %v2083_v0 = vsub.f32 %v73_v10, %v188_v49  ;;  %v82_v9 = vld [vmem:[#allocation2 + $0x190] sm:$0xff]  ;;  %v87_v53 = vld [vmem:[#allocation2 + $0x1b8] sm:$0xff]  ;;  %1492 = vmatprep.subr.bf16.mxu1 %v2041_v23  ;;  %1684 = vmatprep.subr.bf16.mxu0 %v2041_v23  ;;  %v204_v42 = vand.u32 4294901760, %v81_v52 }
  0x32   :  { %2965 = vst [vmem:[#allocation55_spill] sm:$0xff] %v2067_v3  ;;  %2966 = vst [vmem:[#allocation56_spill] sm:$0xff] %v2069_v7  ;;  %v202_v7 = vand.u32 4294901760, %v78_v21  ;;  %v2087_v22 = vsub.f32 %v75_v29, %v192_v50  ;;  %v2089_v5 = vpack.c.bf16 %v194_v16, %v190_v33  ;;  %v208_v17 = vand.u32 4294901760, %v83_v25  ;;  %v89_v29 = vld [vmem:[#allocation2 + $0x1c8] sm:$0xff]  ;;  %v91_v50 = vld [vmem:[#allocation2 + $0x1d8] sm:$0xff] }
  0x33   :  { %2967 = vst [vmem:[#allocation57_spill] sm:$0xff] %v2071_v24  ;;  %2968 = vst [vmem:[#allocation58_spill] sm:$0xff] %v2073_v18  ;;  %v2091_v2 = vsub.f32 %v72_v20, %v190_v33  ;;  %v2095_v10 = vpack.c.bf16 %v200_v51, %v196_v41  ;;  %v2097_v49 = vsub.f32 %v77_v43, %v196_v41  ;;  %v206_v24 = vand.u32 4294901760, %v80_v57 }
  0x34   :  { %2969 = vst [vmem:[#allocation59_spill] sm:$0xff] %v2075_v4  ;;  %2970 = vst [vmem:[#allocation60_spill] sm:$0xff] %v2077_v13  ;;  %v2093_v13 = vsub.f32 %v74_v19, %v194_v16  ;;  %v86_v4 = vld [vmem:[#allocation2 + $0x1b0] sm:$0xff]  ;;  %v210_v62 = vand.u32 4294901760, %v82_v9  ;;  %v212_v56 = vand.u32 4294901760, %v85_v31  ;;  %v216_v23 = vand.u32 4294901760, %v87_v53  ;;  %1494 = vmatpush1.bf16.msra.mxu1 %v2045_v40  ;;  %1686 = vmatpush1.bf16.msra.mxu0 %v2045_v40 }
  0x35   :  { %2971 = vst [vmem:[#allocation61_spill] sm:$0xff] %v2081_v55  ;;  %2972 = vst [vmem:[#allocation62_spill] sm:$0xff] %v2083_v0  ;;  %v84_v0 = vld [vmem:[#allocation2 + $0x1a0] sm:$0xff]  ;;  %v2101_v20 = vsub.f32 %v79_v48, %v200_v51  ;;  %v2103_v19 = vpack.c.bf16 %v202_v7, %v198_v32  ;;  %v2105_v33 = vsub.f32 %v76_v11, %v198_v32  ;;  %1496 = vmatprep.subr.bf16.mxu1 %v2051_v15 }
  0x36   :  { %2973 = vst [vmem:[#allocation63_spill] sm:$0xff] %v2087_v22  ;;  %2974 = vst [vmem:[#allocation64_spill] sm:$0xff] %v2089_v5  ;;  %1688 = vmatprep.subr.bf16.mxu0 %v2051_v15  ;;  %v2109_v16 = vsub.f32 %v78_v21, %v202_v7  ;;  %v2111_v43 = vpack.c.bf16 %v208_v17, %v204_v42  ;;  %v214_v41 = vand.u32 4294901760, %v84_v0  ;;  %v220_v51 = vand.u32 4294901760, %v89_v29  ;;  %v93_v7 = vld [vmem:[#allocation2 + $0x1e8] sm:$0xff] }
  0x37   :  { %2975 = vst [vmem:[#allocation65_spill] sm:$0xff] %v2091_v2  ;;  %2976 = vst [vmem:[#allocation66_spill] sm:$0xff] %v2093_v13  ;;  %v88_v13 = vld [vmem:[#allocation2 + $0x1c0] sm:$0xff]  ;;  %v90_v2 = vld [vmem:[#allocation2 + $0x1d0] sm:$0xff]  ;;  %v2113_v22 = vsub.f32 %v81_v52, %v204_v42  ;;  %v2115_v48 = vsub.f32 %v83_v25, %v208_v17  ;;  %v224_v40 = vand.u32 4294901760, %v91_v50  ;;  %v2117_v11 = vpack.c.bf16 %v210_v62, %v206_v24 }
  0x38   :  { %2977 = vst [vmem:[#allocation67_spill] sm:$0xff] %v2095_v10  ;;  %2978 = vst [vmem:[#allocation68_spill] sm:$0xff] %v2097_v49  ;;  %v218_v49 = vand.u32 4294901760, %v86_v4  ;;  %v2119_v32 = vsub.f32 %v80_v57, %v206_v24  ;;  %v2123_v21 = vpack.c.bf16 %v216_v23, %v212_v56  ;;  %v29_v15 = vld [vmem:[%s2772_s0 + $0x8] sm:$0xff]  ;;  %1498 = vmatpush1.bf16.msra.mxu1 %v2063_v36  ;;  %1690 = vmatpush1.bf16.msra.mxu0 %v2063_v36 }
  0x39   :  { %2979 = vst [vmem:[#allocation69_spill] sm:$0xff] %v2101_v20  ;;  %2980 = vst [vmem:[#allocation70_spill] sm:$0xff] %v2103_v19  ;;  %v2130_v52 = vsub.f32 %v85_v31, %v212_v56  ;;  %v2132_v25 = vsub.f32 %v87_v53, %v216_v23  ;;  %v222_v42 = vand.u32 4294901760, %v88_v13  ;;  %v226_v24 = vand.u32 4294901760, %v90_v2  ;;  %1500 = vmatprep.subr.bf16.mxu1 %v2067_v3  ;;  %v95_v56 = vld [vmem:[#allocation2 + $0x1f8] sm:$0xff] }
  0x3a   :  { %2981 = vst [vmem:[#allocation71_spill] sm:$0xff] %v2105_v33  ;;  %2982 = vst [vmem:[#allocation72_spill] sm:$0xff] %v2109_v16  ;;  %v2121_v33 = vsub.f32 %v82_v9, %v210_v62  ;;  %v28_v62 = vld [vmem:[%s2772_s0] sm:$0xff]  ;;  %1692 = vmatprep.subr.bf16.mxu0 %v2067_v3  ;;  %v2139_v9 = vpack.c.bf16 %v218_v49, %v214_v41  ;;  %v2141_v57 = vsub.f32 %v84_v0, %v214_v41 }
  0x3b   :  { %2983 = vst [vmem:[#allocation73_spill] sm:$0xff] %v2111_v43  ;;  %2984 = vst [vmem:[#allocation74_spill] sm:$0xff] %v2113_v22  ;;  %v2143_v17 = vsub.f32 %v86_v4, %v218_v49  ;;  %v2145_v31 = vpack.c.bf16 %v224_v40, %v220_v51  ;;  %v2147_v23 = vsub.f32 %v89_v29, %v220_v51  ;;  %v228_v53 = vand.u32 4294901760, %v93_v7  ;;  %v92_v49 = vld [vmem:[#allocation2 + $0x1e0] sm:$0xff]  ;;  %v94_v29 = vld [vmem:[#allocation2 + $0x1f0] sm:$0xff] }
  0x3c   :  { %2985 = vst [vmem:[#allocation75_spill] sm:$0xff] %v2115_v48  ;;  %2986 = vst [vmem:[#allocation76_spill] sm:$0xff] %v2117_v11  ;;  %v2149_v36 = vand.u32 4294901760, %v29_v15  ;;  %v283_v3 = vand.u32 4294901760, %v1945_v30  ;;  %1502 = vmatpush1.bf16.msra.mxu1 %v2073_v18  ;;  %1694 = vmatpush1.bf16.msra.mxu0 %v2073_v18  ;;  %v2159_v4 = vpack.c.bf16 %v226_v24, %v222_v42  ;;  %v232_v0 = vand.u32 4294901760, %v95_v56 }
  0x3d   :  { %2987 = vst [vmem:[#allocation77_spill] sm:$0xff] %v2119_v32  ;;  %2988 = vst [vmem:[#allocation78_spill] sm:$0xff] %v2121_v33  ;;  %v2155_v33 = vand.u32 4294901760, %v28_v62  ;;  %1504 = vmatprep.subr.bf16.mxu1 %v2081_v55  ;;  %1696 = vmatprep.subr.bf16.mxu0 %v2081_v55  ;;  %v2169_v51 = vsub.f32 %v90_v2, %v226_v24  ;;  %v289_v18 = vand.u32 4294901760, %v1953_v38  ;;  %v234_v32 = vand.u32 4294901760, %v94_v29 }
  0x3e   :  { %2989 = vst [vmem:[#allocation79_spill] sm:$0xff] %v2123_v21  ;;  %2990 = vst [vmem:[#allocation80_spill] sm:$0xff] %v2130_v52  ;;  %v271_v52 = vand.u32 4294901760, %v1941_v26  ;;  %v2162_v41 = vsub.f32 %v29_v15, %v2149_v36  ;;  %v284_v15 = vsub.f32 %v1945_v30, %v283_v3  ;;  %v295_v2 = vand.u32 4294901760, %v1955_v39 }
  0x3f   :  { %2991 = vst [vmem:[#allocation81_spill] sm:$0xff] %v2132_v25  ;;  %2992 = vst [vmem:[#allocation82_spill] sm:$0xff] %v2139_v9  ;;  %v2151_v25 = vsub.f32 %v91_v50, %v224_v40  ;;  %v277_v40 = vand.u32 4294901760, %v1951_v37  ;;  %v2167_v50 = vsub.f32 %v88_v13, %v222_v42  ;;  %v290_v55 = vsub.f32 %v1953_v38, %v289_v18 }
  0x40   :  { %2993 = vst [vmem:[#allocation83_spill] sm:$0xff] %v2141_v57  ;;  %2994 = vst [vmem:[#allocation84_spill] sm:$0xff] %v2143_v17  ;;  %v272_v17 = vsub.f32 %v1941_v26, %v271_v52  ;;  %v230_v57 = vand.u32 4294901760, %v92_v49  ;;  %1506 = vmatpush1.bf16.msra.mxu1 %v2089_v5  ;;  %1698 = vmatpush1.bf16.msra.mxu0 %v2089_v5  ;;  %v301_v5 = vand.u32 4294901760, %v1961_v45  ;;  %v285_v26 = vand.u32 4294901760, %v284_v15 }
  0x41   :  { %2995 = vst [vmem:[#allocation85_spill] sm:$0xff] %v2145_v31  ;;  %2996 = vst [vmem:[#allocation86_spill] sm:$0xff] %v2147_v23  ;;  %v238_v23 = vand.u32 4294901760, %v2162_v41  ;;  %v278_v13 = vsub.f32 %v1951_v37, %v277_v40  ;;  %1508 = vmatprep.subr.bf16.mxu1 %v2095_v10  ;;  %1700 = vmatprep.subr.bf16.mxu0 %v2095_v10  ;;  %v307_v37 = vand.u32 4294901760, %v1959_v44  ;;  %v313_v24 = vand.u32 4294901760, %v1963_v46 }
  0x42   :  { %2997 = vst [vmem:[#allocation87_spill] sm:$0xff] %v2149_v36  ;;  %2998 = vst [vmem:[#allocation88_spill] sm:$0xff] %v2151_v25  ;;  %v2171_v25 = vsub.f32 %v93_v7, %v228_v53  ;;  %v2178_v36 = vsub.f32 %v28_v62, %v2155_v33  ;;  %v2184_v7 = vpack.c.bf16 %v232_v0, %v228_v53  ;;  %v273_v30 = vand.u32 4294901760, %v272_v17 }
  0x43   :  { %2999 = vst [vmem:[#allocation89_spill] sm:$0xff] %v2155_v33  ;;  %3000 = vst [vmem:[#allocation90_spill] sm:$0xff] %v2159_v4  ;;  %v239_v42 = vsub.f32 %v2162_v41, %v238_v23  ;;  %v2191_v62 = vsub.f32 %v95_v56, %v232_v0  ;;  %v2193_v33 = vsub.f32 %v92_v49, %v230_v57  ;;  %1014 = vmatprep.mubr.f32.mxu0 %v238_v23 }
  0x44   :  { %3001 = vst [vmem:[#allocation91_spill] sm:$0xff] %v2162_v41  ;;  %3002 = vst [vmem:[#allocation92_spill] sm:$0xff] %v2171_v25  ;;  %v2198_v41 = vpack.c.bf16 %v234_v32, %v230_v57  ;;  %v2200_v38 = vsub.f32 %v94_v29, %v234_v32  ;;  %v279_v25 = vand.u32 4294901760, %v278_v13  ;;  %v296_v56 = vsub.f32 %v1955_v39, %v295_v2 }
  0x45   :  { %3003 = vst [vmem:[#allocation93_spill] sm:$0xff] %v2178_v36  ;;  %3004 = vst [vmem:[#allocation94_spill] sm:$0xff] %v2184_v7  ;;  %v240_v53 = vand.u32 4294901760, %v239_v42  ;;  %1510 = vmatpush1.bf16.msra.mxu1 %v2103_v19  ;;  %1702 = vmatpush1.bf16.msra.mxu0 %v2103_v19  ;;  %v3006_v0 = vand.u32 4294901760, %v2178_v36  ;;  %v291_v17 = vand.u32 4294901760, %v290_v55  ;;  %v308_v23 = vsub.f32 %v1959_v44, %v307_v37 }
  0x46   :  { %3005 = vst [vmem:[#allocation95_spill] sm:$0xff] %v2198_v41  ;;  %v319_v57 = vand.u32 4294901760, %v1965_v47  ;;  %1512 = vmatprep.subr.bf16.mxu1 %v2111_v43  ;;  %1704 = vmatprep.subr.bf16.mxu0 %v2111_v43  ;;  %v2214_v32 = vpack.c.bf16 %v283_v3, %v271_v52  ;;  %v302_v29 = vsub.f32 %v1961_v45, %v301_v5  ;;  %v331_v15 = vand.u32 4294901760, %v1975_v58 }
  0x47   :  { %v2208_v49 = vsub.f32 %v2178_v36, %v3006_v0  ;;  %v325_v13 = vand.u32 4294901760, %v1977_v59  ;;  %241 = vmatprep.mubr.f32.mxu1 %v240_v53  ;;  %v2219_v42 = vpack.c.bf16 %v285_v26, %v273_v30  ;;  %v2221_v55 = vpack.c.bf16 %v289_v18, %v277_v40 }
  0x48   :  { %v314_v0 = vsub.f32 %v1963_v46, %v313_v24  ;;  %v337_v19 = vand.u32 4294901760, %v1979_v60  ;;  %v297_v10 = vand.u32 4294901760, %v296_v56  ;;  %v320_v43 = vsub.f32 %v1965_v47, %v319_v57 }
  0x49   :  { %v332_v3 = vsub.f32 %v1975_v58, %v331_v15  ;;  %v343_v52 = vand.u32 4294901760, %v1981_v61  ;;  %1514 = vmatpush1.bf16.msra.mxu1 %v2117_v11  ;;  %1706 = vmatpush1.bf16.msra.mxu0 %v2117_v11  ;;  %v2231_v30 = vpack.c.bf16 %v291_v17, %v279_v25  ;;  %v309_v18 = vand.u32 4294901760, %v308_v23 }
  0x4a   :  { %v2233_v40 = vpack.c.bf16 %v307_v37, %v295_v2  ;;  %1516 = vmatprep.subr.bf16.mxu1 %v2123_v21  ;;  %1708 = vmatprep.subr.bf16.mxu0 %v2123_v21  ;;  %v303_v53 = vand.u32 4294901760, %v302_v29  ;;  %v326_v56 = vsub.f32 %v1977_v59, %v325_v13  ;;  %v338_v44 = vsub.f32 %v1979_v60, %v337_v19 }
  0x4b   :  { %v355_v39 = vand.u32 4294901760, %v1983_v63  ;;  %v315_v58 = vand.u32 4294901760, %v314_v0  ;;  %v349_v11 = vand.u32 4294901760, %v1987_v1  ;;  %v361_v25 = vand.u32 4294901760, %v1991_v6 }
  0x4c   :  { %v367_v17 = vand.u32 4294901760, %v1995_v8  ;;  %v2243_v37 = vpack.c.bf16 %v313_v24, %v301_v5  ;;  %v321_v2 = vand.u32 4294901760, %v320_v43  ;;  %v333_v23 = vand.u32 4294901760, %v332_v3 }
  0x4d   :  { %v344_v26 = vsub.f32 %v1981_v61, %v343_v52  ;;  %1518 = vmatpush1.bf16.msra.mxu1 %v2139_v9  ;;  %1710 = vmatpush1.bf16.msra.mxu0 %v2139_v9  ;;  %v2248_v29 = vpack.c.bf16 %v309_v18, %v297_v10  ;;  %v2250_v21 = vpack.c.bf16 %v331_v15, %v319_v57  ;;  %v379_v60 = vand.u32 4294901760, %v1999_v12 }
  0x4e   :  { %v356_v0 = vsub.f32 %v1983_v63, %v355_v39  ;;  %1520 = vmatprep.subr.bf16.mxu1 %v2145_v31  ;;  %1712 = vmatprep.subr.bf16.mxu0 %v2145_v31  ;;  %v327_v5 = vand.u32 4294901760, %v326_v56  ;;  %v339_v43 = vand.u32 4294901760, %v338_v44  ;;  %v350_v24 = vsub.f32 %v1987_v1, %v349_v11 }
  0x4f   :  { %v362_v3 = vsub.f32 %v1991_v6, %v361_v25  ;;  %v2258_v61 = vpack.c.bf16 %v315_v58, %v303_v53  ;;  %v2260_v10 = vpack.c.bf16 %v337_v19, %v325_v13  ;;  %v368_v57 = vsub.f32 %v1995_v8, %v367_v17 }
  0x50   :  { %v373_v15 = vand.u32 4294901760, %v2003_v14  ;;  %v2264_v18 = vpack.c.bf16 %v333_v23, %v321_v2  ;;  %v345_v9 = vand.u32 4294901760, %v344_v26  ;;  %v380_v63 = vsub.f32 %v1999_v12, %v379_v60 }
  0x51   :  { %v385_v56 = vand.u32 4294901760, %v2005_v27  ;;  %1522 = vmatpush1.bf16.msra.mxu1 %v2159_v4  ;;  %1714 = vmatpush1.bf16.msra.mxu0 %v2159_v4  ;;  %v357_v44 = vand.u32 4294901760, %v356_v0  ;;  %v2270_v58 = vpack.c.bf16 %v355_v39, %v343_v52  ;;  %v391_v19 = vand.u32 4294901760, %v2007_v28 }
  0x52   :  { %v403_v13 = vand.u32 4294901760, %v2013_v34  ;;  %1524 = vmatprep.subr.bf16.mxu1 %v2184_v7  ;;  %1716 = vmatprep.subr.bf16.mxu0 %v2184_v7  ;;  %v2276_v26 = vpack.c.bf16 %v339_v43, %v327_v5  ;;  %v351_v53 = vand.u32 4294901760, %v350_v24  ;;  %v363_v2 = vand.u32 4294901760, %v362_v3  ;;  %v3008_v24 = vld [vmem:[#allocation39_spill] sm:$0xff] }
  0x53   :  { %v397_v23 = vand.u32 4294901760, %v2015_v35  ;;  %v2279_v31 = vpack.c.bf16 %v361_v25, %v349_v11  ;;  %v369_v4 = vand.u32 4294901760, %v368_v57  ;;  %v374_v39 = vsub.f32 %v2003_v14, %v373_v15  ;;  %v3007_v11 = vld [vmem:[#allocation38_spill] sm:$0xff]  ;;  %v3024_v14 = vld [vmem:[#allocation60_spill] sm:$0xff] }
  0x54   :  { %v386_v52 = vsub.f32 %v2005_v27, %v385_v56  ;;  %v381_v0 = vand.u32 4294901760, %v380_v63  ;;  %v392_v12 = vsub.f32 %v2007_v28, %v391_v19  ;;  %v404_v8 = vsub.f32 %v2013_v34, %v403_v13 }
  0x55   :  { %v409_v7 = vand.u32 4294901760, %v2021_v54  ;;  %1526 = vmatpush1.bf16.msra.mxu1 %v2198_v41  ;;  %1718 = vmatpush1.bf16.msra.mxu0 %v2198_v41  ;;  %v1539_v5 = vpack.c.bf16 %v357_v44, %v345_v9  ;;  %v2288_v43 = vpack.c.bf16 %v379_v60, %v367_v17  ;;  %v415_v25 = vand.u32 4294901760, %v3007_v11  ;;  %v3009_v60 = vld [vmem:[#allocation41_spill] sm:$0xff] }
  0x56   :  { %v427_v3 = vand.u32 4294901760, %v3008_v24  ;;  %1528 = vmatprep.subr.bf16.mxu1 %v2219_v42  ;;  %1720 = vmatprep.subr.bf16.mxu0 %v2214_v32  ;;  %v2294_v63 = vpack.c.bf16 %v363_v2, %v351_v53  ;;  %v398_v57 = vsub.f32 %v2015_v35, %v397_v23  ;;  %v375_v28 = vand.u32 4294901760, %v374_v39  ;;  %v3012_v2 = vld [vmem:[#allocation42_spill] sm:$0xff] }
  0x57   :  { %v410_v34 = vsub.f32 %v2021_v54, %v409_v7  ;;  %v387_v27 = vand.u32 4294901760, %v386_v52  ;;  %v2298_v41 = vpack.c.bf16 %v385_v56, %v373_v15  ;;  %v421_v9 = vand.u32 4294901760, %v3009_v60  ;;  %v3014_v52 = vld [vmem:[#allocation45_spill] sm:$0xff] }
  0x58   :  { %v3010_v17 = vand.u32 4294901760, %v2208_v49  ;;  %v3011_v44 = vand.u32 4294901760, %v2178_v36  ;;  %v2305_v42 = vpack.c.bf16 %v381_v0, %v369_v4  ;;  %v393_v32 = vand.u32 4294901760, %v392_v12  ;;  %v3013_v12 = vld [vmem:[#allocation43_spill] sm:$0xff] }
  0x59   :  { %v405_v53 = vand.u32 4294901760, %v404_v8  ;;  %v433_v35 = vand.u32 4294901760, %v3012_v2  ;;  %v2310_v15 = vpack.c.bf16 %v403_v13, %v391_v19  ;;  %v416_v56 = vsub.f32 %v3007_v11, %v415_v25  ;;  %v3015_v19 = vld [vmem:[#allocation47_spill] sm:$0xff]  ;;  %v3020_v11 = vld [vmem:[#allocation54_spill] sm:$0xff] }
  0x5a   :  { %247 = vmatmul.mubr.f32.vlgmr.msra.gmra.mrb[0].mxu1 %v3010_v17  ;;  %1018 = vmatmul.mubr.f32.vlgmr.msra.gmra.mrb[0].mxu0 %v3011_v44  ;;  %v428_v49 = vsub.f32 %v3008_v24, %v427_v3  ;;  %v399_v4 = vand.u32 4294901760, %v398_v57  ;;  %v411_v39 = vand.u32 4294901760, %v410_v34  ;;  %v439_v8 = vand.u32 4294901760, %v3013_v12  ;;  %v3017_v57 = vld [vmem:[#allocation50_spill] sm:$0xff] }
  0x5b   :  { %1530 = vmatpush1.bf16.msra.mxu1 %v2231_v30  ;;  %1722 = vmatpush1.bf16.msra.mxu0 %v2221_v55  ;;  %v451_v0 = vand.u32 4294901760, %v3014_v52  ;;  %v2318_v17 = vpack.c.bf16 %v387_v27, %v375_v28  ;;  %v422_v55 = vsub.f32 %v3009_v60, %v421_v9  ;;  %v434_v30 = vsub.f32 %v3012_v2, %v433_v35  ;;  %v3018_v60 = vld [vmem:[#allocation51_spill] sm:$0xff] }
  0x5c   :  { %1532 = vmatprep.subr.bf16.mxu1 %v2248_v29  ;;  %1724 = vmatprep.subr.bf16.mxu0 %v2233_v40  ;;  %v445_v13 = vand.u32 4294901760, %v3015_v19  ;;  %v2323_v44 = vpack.c.bf16 %v405_v53, %v393_v32  ;;  %v2325_v36 = vpack.c.bf16 %v409_v7, %v397_v23  ;;  %v3016_v29 = vld [vmem:[#allocation48_spill] sm:$0xff]  ;;  %v463_v34 = vand.u32 4294901760, %v3017_v57 }
  0x5d   :  { %v457_v40 = vand.u32 4294901760, %v3016_v29  ;;  %v417_v27 = vand.u32 4294901760, %v416_v56  ;;  %v429_v28 = vand.u32 4294901760, %v428_v49  ;;  %v2331_v24 = vpack.c.bf16 %v427_v3, %v415_v25  ;;  %v3019_v56 = vld [vmem:[#allocation52_spill] sm:$0xff] }
  0x5e   :  { %v475_v2 = vand.u32 4294901760, %v3018_v60  ;;  %v2336_v7 = vpack.c.bf16 %v411_v39, %v399_v4  ;;  %v440_v23 = vsub.f32 %v3013_v12, %v439_v8  ;;  %v452_v32 = vsub.f32 %v3014_v52, %v451_v0 }
  0x5f   :  { %1534 = vmatpush1.bf16.msra.mxu1 %v2258_v61  ;;  %1726 = vmatpush1.bf16.msra.mxu0 %v2243_v37  ;;  %v423_v53 = vand.u32 4294901760, %v422_v55  ;;  %v435_v61 = vand.u32 4294901760, %v434_v30  ;;  %v446_v37 = vsub.f32 %v3015_v19, %v445_v13  ;;  %v469_v49 = vand.u32 4294901760, %v3019_v56  ;;  %v3021_v55 = vld [vmem:[#allocation56_spill] sm:$0xff]  ;;  %v3022_v19 = vld [vmem:[#allocation57_spill] sm:$0xff] }
  0x60   :  { %1536 = vmatprep.subr.bf16.mxu1 %v2264_v18  ;;  %1728 = vmatprep.subr.bf16.mxu0 %v2250_v21  ;;  %v2342_v25 = vpack.c.bf16 %v433_v35, %v421_v9  ;;  %v458_v3 = vsub.f32 %v3016_v29, %v457_v40  ;;  %v464_v18 = vsub.f32 %v3017_v57, %v463_v34  ;;  %v481_v21 = vand.u32 4294901760, %v3020_v11  ;;  %v3023_v29 = vld [vmem:[#allocation59_spill] sm:$0xff] }
  0x61   :  { %v2349_v4 = vpack.c.bf16 %v429_v28, %v417_v27  ;;  %v476_v39 = vsub.f32 %v3018_v60, %v475_v2  ;;  %v487_v30 = vand.u32 4294901760, %v3021_v55  ;;  %v499_v52 = vand.u32 4294901760, %v3022_v19 }
  0x62   :  { %v441_v35 = vand.u32 4294901760, %v440_v23  ;;  %v453_v9 = vand.u32 4294901760, %v452_v32  ;;  %v2355_v57 = vpack.c.bf16 %v451_v0, %v439_v8  ;;  %v493_v12 = vand.u32 4294901760, %v3023_v29  ;;  %v3026_v23 = vld [vmem:[#allocation63_spill] sm:$0xff] }
  0x63   :  { %1538 = vmatpush1.bf16.msra.mxu1 %v2276_v26  ;;  %1730 = vmatpush1.bf16.msra.mxu0 %v2260_v10  ;;  %v2358_v26 = vpack.c.bf16 %v435_v61, %v423_v53  ;;  %v447_v10 = vand.u32 4294901760, %v446_v37  ;;  %v470_v27 = vsub.f32 %v3019_v56, %v469_v49  ;;  %v482_v28 = vsub.f32 %v3020_v11, %v481_v21  ;;  %v3028_v56 = vld [vmem:[#allocation66_spill] sm:$0xff] }
  0x64   :  { %1540 = vmatprep.subr.bf16.mxu1 %v1539_v5  ;;  %1732 = vmatprep.subr.bf16.mxu0 %v2270_v58  ;;  %v459_v60 = vand.u32 4294901760, %v458_v3  ;;  %v465_v54 = vand.u32 4294901760, %v464_v18  ;;  %v505_v6 = vand.u32 4294901760, %v3024_v14  ;;  %v3025_v5 = vld [vmem:[#allocation62_spill] sm:$0xff]  ;;  %v477_v58 = vand.u32 4294901760, %v476_v39 }
  0x65   :  { %v511_v1 = vand.u32 4294901760, %v3025_v5  ;;  %v488_v8 = vsub.f32 %v3021_v55, %v487_v30  ;;  %v500_v0 = vsub.f32 %v3022_v19, %v499_v52  ;;  %v523_v32 = vand.u32 4294901760, %v3026_v23 }
  0x66   :  { %v2371_v53 = vpack.c.bf16 %v457_v40, %v445_v13  ;;  %v494_v61 = vsub.f32 %v3023_v29, %v493_v12  ;;  %v506_v37 = vsub.f32 %v3024_v14, %v505_v6  ;;  %v2376_v18 = vpack.c.bf16 %v475_v2, %v463_v34 }
  0x67   :  { %1542 = vmatpush1.bf16.msra.mxu1 %v2294_v63  ;;  %1734 = vmatpush1.bf16.msra.mxu0 %v2279_v31  ;;  %v3027_v63 = vld [vmem:[#allocation65_spill] sm:$0xff]  ;;  %v1555_v31 = vpack.c.bf16 %v453_v9, %v441_v35  ;;  %v471_v39 = vand.u32 4294901760, %v470_v27  ;;  %v483_v55 = vand.u32 4294901760, %v482_v28  ;;  %v1557_v19 = vpack.c.bf16 %v459_v60, %v447_v10 }
  0x68   :  { %1544 = vmatprep.subr.bf16.mxu1 %v2305_v42  ;;  %1736 = vmatprep.subr.bf16.mxu0 %v2288_v43  ;;  %v517_v3 = vand.u32 4294901760, %v3027_v63  ;;  %v512_v11 = vsub.f32 %v3025_v5, %v511_v1  ;;  %v524_v42 = vsub.f32 %v3026_v23, %v523_v32  ;;  %v529_v43 = vand.u32 4294901760, %v3028_v56  ;;  %v3078_v5 = vld [vmem:[#allocation78_spill] sm:$0xff] }
  0x69   :  { %v2383_v13 = vpack.c.bf16 %v477_v58, %v465_v54  ;;  %v2385_v40 = vpack.c.bf16 %v481_v21, %v469_v49  ;;  %v489_v35 = vand.u32 4294901760, %v488_v8  ;;  %v501_v2 = vand.u32 4294901760, %v500_v0  ;;  %v3029_v54 = vld [vmem:[#allocation68_spill] sm:$0xff]  ;;  %v3030_v58 = vld [vmem:[#allocation71_spill] sm:$0xff] }
  0x6a   :  { %v2389_v60 = vpack.c.bf16 %v499_v52, %v487_v30  ;;  %v495_v34 = vand.u32 4294901760, %v494_v61  ;;  %v507_v9 = vand.u32 4294901760, %v506_v37  ;;  %v518_v10 = vsub.f32 %v3027_v63, %v517_v3 }
  0x6b   :  { %1546 = vmatpush1.bf16.msra.mxu1 %v2318_v17  ;;  %1738 = vmatpush1.bf16.msra.mxu0 %v2298_v41  ;;  %v2392_v27 = vpack.c.bf16 %v483_v55, %v471_v39  ;;  %v530_v41 = vsub.f32 %v3028_v56, %v529_v43  ;;  %v535_v17 = vand.u32 4294901760, %v3029_v54  ;;  %v547_v49 = vand.u32 4294901760, %v2101_v20 }
  0x6c   :  { %1548 = vmatprep.subr.bf16.mxu1 %v2323_v44  ;;  %1740 = vmatprep.subr.bf16.mxu0 %v2310_v15  ;;  %v513_v21 = vand.u32 4294901760, %v512_v11  ;;  %v525_v28 = vand.u32 4294901760, %v524_v42  ;;  %v541_v44 = vand.u32 4294901760, %v3030_v58  ;;  %v553_v15 = vand.u32 4294901760, %v2109_v16 }
  0x6d   :  { %v2401_v52 = vpack.c.bf16 %v501_v2, %v489_v35  ;;  %v2403_v55 = vpack.c.bf16 %v505_v6, %v493_v12  ;;  %v559_v30 = vand.u32 4294901760, %v2113_v22  ;;  %v571_v8 = vand.u32 4294901760, %v2115_v48  ;;  %v3032_v35 = vld [vmem:[#allocation78_spill] sm:$0xff] }
  0x6e   :  { %v2409_v11 = vpack.c.bf16 %v507_v9, %v495_v34  ;;  %v2411_v0 = vpack.c.bf16 %v523_v32, %v511_v1  ;;  %v519_v61 = vand.u32 4294901760, %v518_v10  ;;  %v2414_v39 = vpack.c.bf16 %v529_v43, %v517_v3  ;;  %v3033_v9 = vld [vmem:[#allocation80_spill] sm:$0xff] }
  0x6f   :  { %1550 = vmatpush1.bf16.msra.mxu1 %v2336_v7  ;;  %1742 = vmatpush1.bf16.msra.mxu0 %v2325_v36  ;;  %v3031_v7 = vld [vmem:[#allocation77_spill] sm:$0xff]  ;;  %v531_v36 = vand.u32 4294901760, %v530_v41  ;;  %v536_v6 = vsub.f32 %v3029_v54, %v535_v17  ;;  %v548_v12 = vsub.f32 %v2101_v20, %v547_v49  ;;  %v2418_v42 = vpack.c.bf16 %v525_v28, %v513_v21  ;;  %v3038_v54 = vld [vmem:[#allocation88_spill] sm:$0xff] }
  0x70   :  { %1552 = vmatprep.subr.bf16.mxu1 %v2349_v4  ;;  %1744 = vmatprep.subr.bf16.mxu0 %v2331_v24  ;;  %v565_v37 = vand.u32 4294901760, %v3031_v7  ;;  %v542_v4 = vsub.f32 %v3030_v58, %v541_v44  ;;  %v554_v24 = vsub.f32 %v2109_v16, %v553_v15  ;;  %v577_v2 = vand.u32 4294901760, %v3032_v35  ;;  %v3034_v41 = vld [vmem:[#allocation81_spill] sm:$0xff]  ;;  %v3037_v58 = vld [vmem:[#allocation86_spill] sm:$0xff] }
  0x71   :  { %v2425_v1 = vpack.c.bf16 %v547_v49, %v535_v17  ;;  %v560_v32 = vsub.f32 %v2113_v22, %v559_v30  ;;  %v572_v3 = vsub.f32 %v2115_v48, %v571_v8  ;;  %v583_v10 = vand.u32 4294901760, %v3033_v9  ;;  %v3035_v49 = vld [vmem:[#allocation83_spill] sm:$0xff]  ;;  %v3036_v48 = vld [vmem:[#allocation84_spill] sm:$0xff] }
  0x72   :  { %v566_v43 = vsub.f32 %v3031_v7, %v565_v37  ;;  %v578_v34 = vsub.f32 %v3032_v35, %v577_v2  ;;  %v595_v21 = vand.u32 4294901760, %v3034_v41  ;;  %v549_v17 = vand.u32 4294901760, %v548_v12 }
  0x73   :  { %1554 = vmatpush1.bf16.msra.mxu1 %v2358_v26  ;;  %1746 = vmatpush1.bf16.msra.mxu0 %v2342_v25  ;;  %v2434_v26 = vpack.c.bf16 %v531_v36, %v519_v61  ;;  %v537_v25 = vand.u32 4294901760, %v536_v6  ;;  %v589_v28 = vand.u32 4294901760, %v3035_v49  ;;  %v543_v22 = vand.u32 4294901760, %v542_v4  ;;  %v31_v36 = vld [vmem:[%s2772_s0 + $0x18] sm:$0xff] }
  0x74   :  { %1556 = vmatprep.subr.bf16.mxu1 %v1555_v31  ;;  %1748 = vmatprep.subr.bf16.mxu0 %v2355_v57  ;;  %v555_v16 = vand.u32 4294901760, %v554_v24  ;;  %v601_v31 = vand.u32 4294901760, %v3036_v48  ;;  %v607_v57 = vand.u32 4294901760, %v3037_v58  ;;  %v2440_v35 = vpack.c.bf16 %v553_v15, %v541_v44 }
  0x75   :  { %v561_v7 = vand.u32 4294901760, %v560_v32  ;;  %v573_v20 = vand.u32 4294901760, %v572_v3  ;;  %v619_v61 = vand.u32 4294901760, %v3038_v54  ;;  %v567_v6 = vand.u32 4294901760, %v566_v43 }
  0x76   :  { %v579_v12 = vand.u32 4294901760, %v578_v34  ;;  %v1571_v44 = vpack.c.bf16 %v549_v17, %v537_v25  ;;  %v2450_v15 = vpack.c.bf16 %v571_v8, %v559_v30  ;;  %v590_v4 = vsub.f32 %v3035_v49, %v589_v28  ;;  %v3040_v25 = vld [vmem:[#allocation92_spill] sm:$0xff] }
  0x77   :  { %1558 = vmatpush1.bf16.msra.mxu1 %v1557_v19  ;;  %1750 = vmatpush1.bf16.msra.mxu0 %v2371_v53  ;;  %v584_v19 = vsub.f32 %v3033_v9, %v583_v10  ;;  %v596_v53 = vsub.f32 %v3034_v41, %v595_v21  ;;  %v602_v24 = vsub.f32 %v3036_v48, %v601_v31  ;;  %v2907_v17 = vand.u32 4294901760, %v3040_v25 }
  0x78   :  { %1560 = vmatprep.subr.bf16.mxu1 %v2383_v13  ;;  %1752 = vmatprep.subr.bf16.mxu0 %v2376_v18  ;;  %v2454_v32 = vpack.c.bf16 %v555_v16, %v543_v22  ;;  %v608_v3 = vsub.f32 %v3037_v58, %v607_v57  ;;  %v620_v13 = vsub.f32 %v3038_v54, %v619_v61  ;;  %v2458_v18 = vand.u32 4294901760, %v31_v36  ;;  %v30_v22 = vld [vmem:[%s2772_s0 + $0x10] sm:$0xff] }
  0x79   :  { %v2462_v43 = vpack.c.bf16 %v573_v20, %v561_v7  ;;  %v2464_v30 = vpack.c.bf16 %v577_v2, %v565_v37  ;;  %v2466_v8 = vpack.c.bf16 %v595_v21, %v583_v10  ;;  %v2473_v16 = vpack.c.bf16 %v579_v12, %v567_v6 }
  0x7a   :  { %v585_v34 = vand.u32 4294901760, %v584_v19  ;;  %v591_v20 = vand.u32 4294901760, %v590_v4  ;;  %v603_v7 = vand.u32 4294901760, %v602_v24  ;;  %v2908_v37 = vand.u32 4294901760, %v2169_v51 }
  0x7b   :  { %1562 = vmatpush1.bf16.msra.mxu1 %v2392_v27  ;;  %1754 = vmatpush1.bf16.msra.mxu0 %v2385_v40  ;;  %v597_v27 = vand.u32 4294901760, %v596_v53  ;;  %v2909_v40 = vand.u32 4294901760, %v2167_v50  ;;  %v2478_v2 = vsub.f32 %v31_v36, %v2458_v18  ;;  %v609_v10 = vand.u32 4294901760, %v608_v3 }
  0x7c   :  { %1564 = vmatprep.subr.bf16.mxu1 %v2401_v52  ;;  %1756 = vmatprep.subr.bf16.mxu0 %v2389_v60  ;;  %v621_v21 = vand.u32 4294901760, %v620_v13  ;;  %v2481_v52 = vand.u32 4294901760, %v30_v22  ;;  %v2485_v60 = vpack.c.bf16 %v601_v31, %v589_v28  ;;  %v2906_v12 = vand.u32 4294901760, %v2191_v62 }
  0x7d   :  { %3039 = vst [vmem:[#allocation59_spill] sm:$0xff] %v2478_v2  ;;  %v254_v6 = vand.u32 4294901760, %v2478_v2  ;;  %v2905_v19 = vand.u32 4294901760, %v2193_v33  ;;  %v1579_v36 = vpack.c.bf16 %v597_v27, %v585_v34  ;;  %v2492_v53 = vpack.c.bf16 %v619_v61, %v607_v57  ;;  %v3043_v27 = vld [vmem:[#allocation19_spill] sm:$0xff] }
  0x7e   :  { %v2495_v4 = vsub.f32 %v30_v22, %v2481_v52  ;;  %v2506_v31 = vpack.c.bf16 %v621_v21, %v609_v10  ;;  %v2514_v57 = vsub.f32 %v3040_v25, %v2907_v17  ;;  %v644_v3 = vsub.f32 %v2191_v62, %v2906_v12  ;;  %v3045_v21 = vld [vmem:[#allocation21_spill] sm:$0xff]  ;;  %v3050_v34 = vld [vmem:[#allocation27_spill] sm:$0xff]  ;;  %v3060_v17 = vld [vmem:[#allocation42_spill] sm:$0xff] }
  0x7f   :  { %1566 = vmatpush1.bf16.msra.mxu1 %v2409_v11  ;;  %1758 = vmatpush1.bf16.msra.mxu0 %v2403_v55  ;;  %v2497_v11 = vpack.c.bf16 %v603_v7, %v591_v20  ;;  %v2502_v55 = vsub.f32 %v2167_v50, %v2909_v40  ;;  %v255_v28 = vsub.f32 %v2478_v2, %v254_v6  ;;  %v3066_v20 = vld [vmem:[#allocation51_spill] sm:$0xff]  ;;  %v3070_v12 = vld [vmem:[#allocation57_spill] sm:$0xff]  ;;  %v3081_v23 = vand.u32 4294901760, %v3040_v25 }
  0x80   :  { %1568 = vmatprep.subr.bf16.mxu1 %v2418_v42  ;;  %1760 = vmatprep.subr.bf16.mxu0 %v2411_v0  ;;  %3041 = vst [vmem:[#allocation60_spill] sm:$0xff] %v2495_v4  ;;  %v2912_v42 = vand.u32 4294901760, %v2200_v38  ;;  %v626_v0 = vsub.f32 %v2169_v51, %v2908_v37  ;;  %v260_v61 = vand.u32 4294901760, %v2495_v4  ;;  %v2525_v13 = vsub.f32 %v2193_v33, %v2905_v19  ;;  %v3048_v19 = vld [vmem:[#allocation87_spill] sm:$0xff]  ;;  %v3074_v37 = vld [vmem:[#allocation72_spill] sm:$0xff] }
  0x81   :  { %1026 = vmatprep.mubr.f32.mxu0 %v254_v6  ;;  %v256_v24 = vand.u32 4294901760, %v255_v28  ;;  %v3073_v40 = vld [vmem:[#allocation71_spill] sm:$0xff]  ;;  %v3075_v6 = vld [vmem:[#allocation74_spill] sm:$0xff] }
  0x82   :  { %v650_v7 = vsub.f32 %v2200_v38, %v2912_v42  ;;  %1030 = vmatmul.mubr.f32.gmra.mrb[2].mxu0 %v260_v61  ;;  %v627_v2 = vand.u32 4294901760, %v626_v0  ;;  %v3076_v28 = vld [vmem:[#allocation75_spill] sm:$0xff]  ;;  %v645_v42 = vand.u32 4294901760, %v644_v3  ;;  %v3080_v3 = vand.u32 4294901760, %v2169_v51 }
  0x83   :  { %1570 = vmatpush1.bf16.msra.mxu1 %v2434_v26  ;;  %1762 = vmatpush1.bf16.msra.mxu0 %v2414_v39  ;;  %v261_v26 = vsub.f32 %v2495_v4, %v260_v61  ;;  %v3042_v39 = vld [vmem:[#allocation18_spill] sm:$0xff]  ;;  %v615_v61 = vand.u32 4294901760, %v2502_v55  ;;  %v3064_v4 = vld [vmem:[#allocation48_spill] sm:$0xff]  ;;  %v1639_v10 = vpack.c.bf16 %v3076_v28, %v3075_v6  ;;  %v3164_v28 = vpack.c.bf16 %v2169_v51, %v2167_v50 }
  0x84   :  { %1572 = vmatprep.subr.bf16.mxu1 %v1571_v44  ;;  %1764 = vmatprep.subr.bf16.mxu0 %v2425_v1  ;;  %v3056_v1 = vld [vmem:[#allocation36_spill] sm:$0xff]  ;;  %v651_v0 = vand.u32 4294901760, %v650_v7  ;;  %v3161_v6 = vld [vmem:[#allocation82_spill] sm:$0xff] }
  0x85   :  { %257 = vmatprep.mubr.f32.mxu1 %v256_v24  ;;  %v262_v22 = vand.u32 4294901760, %v261_v26  ;;  %1293 = vmatprep.mubr.f32.mxu0 %v3048_v19  ;;  %v3061_v24 = vld [vmem:[#allocation43_spill] sm:$0xff]  ;;  %v3069_v44 = vld [vmem:[#allocation56_spill] sm:$0xff]  ;;  %v3072_v26 = vld [vmem:[#allocation69_spill] sm:$0xff] }
  0x86   :  { %v3071_v55 = vld [vmem:[#allocation68_spill] sm:$0xff] }
  0x87   :  { %1574 = vmatpush1.bf16.msra.mxu1 %v2454_v32  ;;  %1766 = vmatpush1.bf16.msra.mxu0 %v2440_v35  ;;  %v3062_v32 = vld [vmem:[#allocation45_spill] sm:$0xff]  ;;  %v3063_v35 = vld [vmem:[#allocation47_spill] sm:$0xff]  ;;  %v3172_v51 = vld [vmem:[#allocation60_spill] sm:$0xff] }
  0x88   :  { %1576 = vmatprep.subr.bf16.mxu1 %v2462_v43  ;;  %1768 = vmatprep.subr.bf16.mxu0 %v2450_v15  ;;  %v633_v43 = vand.u32 4294901760, %v2514_v57  ;;  %v3077_v15 = vld [vmem:[#allocation77_spill] sm:$0xff] }
  0x89   :  { %263 = vmatmul.mubr.f32.gmra.mrb[2].mxu1 %v262_v22 }
  0x8a   :  { %654 = vmatprep.mubr.f32.mxu1 %v3048_v19  ;;  %v1587_v57 = vpack.c.bf16 %v645_v42, %v633_v43  ;;  %v3088_v42 = vld [vmem:[#allocation12_spill] sm:$0xff] }
  0x8b   :  { %1578 = vmatpush1.bf16.msra.mxu1 %v2473_v16  ;;  %1770 = vmatpush1.bf16.msra.mxu0 %v2464_v30  ;;  %v639_v16 = vand.u32 4294901760, %v2525_v13  ;;  %v3085_v13 = vld [vmem:[#allocation8_spill] sm:$0xff] }
  0x8c   :  { %1580 = vmatprep.subr.bf16.mxu1 %v1579_v36  ;;  %1772 = vmatprep.subr.bf16.mxu0 %v2466_v8  ;;  %v1585_v36 = vpack.c.bf16 %v627_v2, %v615_v61  ;;  %v3079_v8 = vand.u32 4294901760, %v2167_v50  ;;  %v3084_v61 = vand.u32 4294901760, %v2200_v38  ;;  %v3171_v50 = vld [vmem:[#allocation59_spill] sm:$0xff] }
  0x8d   :  { %v1589_v2 = vpack.c.bf16 %v651_v0, %v639_v16  ;;  %v3091_v0 = vld [vmem:[#allocation15_spill] sm:$0xff] }
  0x8e   :  { %v1777_v22 = vpack.c.bf16 %v3080_v3, %v3079_v8  ;;  %v3095_v3 = vpack.c.bf16 %v1963_v46, %v1961_v45  ;;  %v3102_v45 = vld [vmem:[#allocation20_spill] sm:$0xff] }
  0x8f   :  { %1582 = vmatpush1.bf16.msra.mxu1 %v2497_v11  ;;  %1774 = vmatpush1.bf16.msra.mxu0 %v2485_v60  ;;  %v3082_v11 = vand.u32 4294901760, %v2191_v62  ;;  %v3083_v60 = vand.u32 4294901760, %v2193_v33  ;;  %v3103_v46 = vpack.c.bf16 %v3045_v21, %v3102_v45  ;;  %v3115_v21 = vld [vmem:[#allocation28_spill] sm:$0xff] }
  0x90   :  { %1584 = vmatprep.subr.bf16.mxu1 %v2506_v31  ;;  %1776 = vmatprep.subr.bf16.mxu0 %v2492_v53  ;;  %v3086_v31 = vld [vmem:[#allocation9_spill] sm:$0xff]  ;;  %v3087_v53 = vld [vmem:[#allocation11_spill] sm:$0xff]  ;;  %v3129_v45 = vld [vmem:[#allocation40_spill] sm:$0xff] }
  0x91   :  { %v1779_v30 = vpack.c.bf16 %v3082_v11, %v3081_v23  ;;  %v1781_v8 = vpack.c.bf16 %v3084_v61, %v3083_v60  ;;  %v1591_v7 = vpack.c.bf16 %v3086_v31, %v3085_v13  ;;  %v1593_v43 = vpack.c.bf16 %v3088_v42, %v3087_v53  ;;  %v3089_v23 = vld [vmem:[#allocation5_spill] sm:$0xff]  ;;  %v3096_v11 = vld [vmem:[#allocation10_spill] sm:$0xff]  ;;  %v3099_v61 = vld [vmem:[#allocation91_spill] sm:$0xff] }
  0x92   :  { %v3098_v60 = vld [vmem:[#allocation14_spill] sm:$0xff]  ;;  %v3101_v13 = vld [vmem:[#allocation16_spill] sm:$0xff]  ;;  %v3104_v31 = vld [vmem:[#allocation17_spill] sm:$0xff] }
  0x93   :  { %1586 = vmatpush1.bf16.msra.mxu1 %v1585_v36  ;;  %1778 = vmatpush1.bf16.msra.mxu0 %v1777_v22  ;;  %v3090_v22 = vld [vmem:[#allocation13_spill] sm:$0xff]  ;;  %v3108_v53 = vld [vmem:[#allocation22_spill] sm:$0xff] }
  0x94   :  { %1588 = vmatprep.subr.bf16.mxu1 %v1587_v57  ;;  %1780 = vmatprep.subr.bf16.mxu0 %v1779_v30  ;;  %v1595_v16 = vpack.c.bf16 %v3091_v0, %v3090_v22  ;;  %v3092_v36 = vld [vmem:[#allocation89_spill] sm:$0xff]  ;;  %v3093_v30 = vld [vmem:[#allocation6_spill] sm:$0xff]  ;;  %v3094_v57 = vld [vmem:[#allocation7_spill] sm:$0xff] }
  0x95   :  { %v3116_v22 = vld [vmem:[#allocation33_spill] sm:$0xff]  ;;  %v3117_v0 = vld [vmem:[#allocation31_spill] sm:$0xff] }
  0x97   :  { %1590 = vmatpush1.bf16.msra.mxu1 %v1589_v2  ;;  %1782 = vmatpush1.bf16.msra.mxu0 %v1781_v8  ;;  %v3097_v2 = vpack.c.bf16 %v3042_v39, %v1965_v47  ;;  %v3100_v8 = vpack.c.bf16 %v3043_v27, %v1977_v59  ;;  %v3105_v47 = vld [vmem:[#allocation24_spill] sm:$0xff]  ;;  %v3106_v39 = vld [vmem:[#allocation23_spill] sm:$0xff]  ;;  %v3111_v59 = vld [vmem:[#allocation25_spill] sm:$0xff] }
  0x98   :  { %1592 = vmatprep.subr.bf16.mxu1 %v1591_v7  ;;  %1784 = vmatprep.subr.bf16.mxu0 %v3089_v23  ;;  %v3107_v7 = vpack.c.bf16 %v3105_v47, %v3106_v39  ;;  %v3112_v27 = vld [vmem:[#allocation30_spill] sm:$0xff] }
  0x99   :  { %v3133_v47 = vld [vmem:[#allocation46_spill] sm:$0xff] }
  0x9a   :  { %656 = vmatmul.mubr.f32.vlgmr.msra.gmra.mrb[0].mxu1 %v3092_v36  ;;  %1295 = vmatmul.mubr.f32.vlgmr.msra.gmra.mrb[0].mxu0 %v3092_v36  ;;  %v3134_v39 = vld [vmem:[#allocation50_spill] sm:$0xff] }
  0x9b   :  { %1594 = vmatpush1.bf16.msra.mxu1 %v1593_v43  ;;  %1786 = vmatpush1.bf16.msra.mxu0 %v3093_v30  ;;  %v3113_v43 = vld [vmem:[#allocation29_spill] sm:$0xff]  ;;  %v3119_v30 = vld [vmem:[#allocation32_spill] sm:$0xff] }
  0x9c   :  { %1596 = vmatprep.subr.bf16.mxu1 %v1595_v16  ;;  %1788 = vmatprep.subr.bf16.mxu0 %v3094_v57  ;;  %v3114_v23 = vpack.c.bf16 %v3112_v27, %v3113_v43  ;;  %v3118_v16 = vpack.c.bf16 %v3116_v22, %v3117_v0  ;;  %v3120_v57 = vld [vmem:[#allocation34_spill] sm:$0xff] }
  0x9d   :  { %662 = vmatprep.mubr.f32.mxu1 %v2458_v18  ;;  %1301 = vmatprep.mubr.f32.mxu0 %v2458_v18  ;;  %v3146_v27 = vld [vmem:[#allocation62_spill] sm:$0xff] }
  0x9e   :  { %664 = vmatmul.mubr.f32.gmra.mrb[2].mxu1 %v2481_v52  ;;  %1303 = vmatmul.mubr.f32.gmra.mrb[2].mxu0 %v2481_v52  ;;  %v3154_v22 = vld [vmem:[#allocation70_spill] sm:$0xff] }
  0x9f   :  { %1598 = vmatpush1.bf16.msra.mxu1 %v3095_v3  ;;  %1790 = vmatpush1.bf16.msra.mxu0 %v3096_v11  ;;  %v3121_v3 = vpack.c.bf16 %v3056_v1, %v3120_v57  ;;  %v3123_v11 = vld [vmem:[#allocation39_spill] sm:$0xff]  ;;  %v3131_v1 = vld [vmem:[#allocation44_spill] sm:$0xff] }
  0xa0   :  { %1600 = vmatprep.subr.bf16.mxu1 %v3097_v2  ;;  %1792 = vmatprep.subr.bf16.mxu0 %v3098_v60  ;;  %v3124_v2 = vld [vmem:[#allocation38_spill] sm:$0xff] }
  0xa1   :  { %864 = vmatprep.mubr.f32.mxu1 %v3099_v61  ;;  %1438 = vmatprep.mubr.f32.mxu0 %v3048_v19  ;;  %v3109_v19 = vld [vmem:[#allocation26_spill] sm:$0xff]  ;;  %v3125_v60 = vpack.c.bf16 %v3123_v11, %v3124_v2  ;;  %v3126_v61 = vld [vmem:[#allocation37_spill] sm:$0xff] }
  0xa2   :  { %v3110_v42 = vpack.c.bf16 %v3050_v34, %v3109_v19  ;;  %v3122_v34 = vld [vmem:[#allocation35_spill] sm:$0xff]  ;;  %v3138_v19 = vld [vmem:[#allocation52_spill] sm:$0xff] }
  0xa3   :  { %1602 = vmatpush1.bf16.msra.mxu1 %v3100_v8  ;;  %1794 = vmatpush1.bf16.msra.mxu0 %v3101_v13  ;;  %v3127_v8 = vld [vmem:[#allocation41_spill] sm:$0xff] }
  0xa4   :  { %1604 = vmatprep.subr.bf16.mxu1 %v3103_v46  ;;  %1796 = vmatprep.subr.bf16.mxu0 %v3104_v31  ;;  %v3128_v13 = vpack.c.bf16 %v3060_v17, %v3127_v8  ;;  %v3130_v46 = vpack.c.bf16 %v3062_v32, %v3061_v24  ;;  %v3132_v31 = vpack.c.bf16 %v3064_v4, %v3063_v35  ;;  %v3136_v17 = vld [vmem:[#allocation49_spill] sm:$0xff]  ;;  %v3142_v4 = vld [vmem:[#allocation55_spill] sm:$0xff] }
  0xa5   :  { %v3140_v24 = vld [vmem:[#allocation53_spill] sm:$0xff]  ;;  %v3141_v32 = vpack.c.bf16 %v3070_v12, %v3069_v44  ;;  %v3143_v35 = vpack.c.bf16 %v3024_v14, %v3023_v29  ;;  %v3150_v12 = vld [vmem:[#allocation64_spill] sm:$0xff]  ;;  %v3151_v44 = vpack.c.bf16 %v3072_v26, %v3071_v55  ;;  %v3152_v14 = vld [vmem:[#allocation67_spill] sm:$0xff]  ;;  %v3153_v29 = vpack.c.bf16 %v3074_v37, %v3073_v40 }
  0xa6   :  { %v3157_v26 = vld [vmem:[#allocation76_spill] sm:$0xff]  ;;  %v3158_v55 = vpack.c.bf16 %v3034_v41, %v3033_v9  ;;  %v3159_v40 = vld [vmem:[#allocation79_spill] sm:$0xff]  ;;  %v3160_v37 = vpack.c.bf16 %v3036_v48, %v3035_v49  ;;  %v3165_v9 = vld [vmem:[#allocation90_spill] sm:$0xff]  ;;  %v3166_v41 = vpack.c.bf16 %v2191_v62, %v3040_v25  ;;  %v3168_v49 = vpack.c.bf16 %v2200_v38, %v2193_v33 }
  0xa7   :  { %1606 = vmatpush1.bf16.msra.mxu1 %v3107_v7  ;;  %1798 = vmatpush1.bf16.msra.mxu0 %v3108_v53  ;;  %v3135_v7 = vpack.c.bf16 %v3066_v20, %v3134_v39  ;;  %v3137_v53 = vld [vmem:[#allocation54_spill] sm:$0xff]  ;;  %v98_v62 = vlaneseq  ;;  %v96_v38 = vld [vmem:[%s2774_s2] sm:$0x3] }
  0xa8   :  { %1608 = vmatprep.subr.bf16.mxu1 %v3110_v42  ;;  %1800 = vmatprep.subr.bf16.mxu0 %v3111_v59  ;;  %v3139_v42 = vpack.c.bf16 %v3137_v53, %v3138_v19  ;;  %v3144_v20 = vld [vmem:[#allocation58_spill] sm:$0xff]  ;;  %v3145_v59 = vld [vmem:[#allocation63_spill] sm:$0xff] }
  0xa9   :  { %v3147_v43 = vpack.c.bf16 %v3145_v59, %v3146_v27  ;;  %v3167_v48 = vld [vmem:[#allocation94_spill] sm:$0xff]  ;;  %v99_v25 = vshrl.u32 %v98_v62, 7 }
  0xab   :  { %1610 = vmatpush1.bf16.msra.mxu1 %v3114_v23  ;;  %1802 = vmatpush1.bf16.msra.mxu0 %v3115_v21  ;;  %v3148_v23 = vld [vmem:[#allocation61_spill] sm:$0xff]  ;;  %v3149_v21 = vpack.c.bf16 %v3028_v56, %v3027_v63  ;;  %v3156_v63 = vpack.c.bf16 %v3078_v5, %v3077_v15  ;;  %v100_v15 = vsub.s32 0, %v99_v25  ;;  %v104_v33 = vsub.s32 1, %v99_v25 }
  0xac   :  { %1612 = vmatprep.subr.bf16.mxu1 %v3118_v16  ;;  %1804 = vmatprep.subr.bf16.mxu0 %v3119_v30  ;;  %v3155_v56 = vld [vmem:[#allocation73_spill] sm:$0xff] }
  0xad   :  { %v3163_v5 = vld [vmem:[#allocation85_spill] sm:$0xff]  ;;  %v101_v0 = vrot.slane %v96_v38, %v100_v15  ;;  %v105_v16 = vrot.slane %v96_v38, %v104_v33 }
  0xaf   :  { %1614 = vmatpush1.bf16.msra.mxu1 %v3121_v3  ;;  %1806 = vmatpush1.bf16.msra.mxu0 %v3122_v34 }
  0xb0   :  { %1616 = vmatprep.subr.bf16.mxu1 %v3125_v60  ;;  %1808 = vmatprep.subr.bf16.mxu0 %v3126_v61 }
  0xb3   :  { %1618 = vmatpush1.bf16.msra.mxu1 %v3128_v13  ;;  %1810 = vmatpush1.bf16.msra.mxu0 %v3129_v45 }
  0xb4   :  { %1620 = vmatprep.subr.bf16.mxu1 %v3130_v46  ;;  %1812 = vmatprep.subr.bf16.mxu0 %v3131_v1 }
  0xb7   :  { %1622 = vmatpush1.bf16.msra.mxu1 %v3132_v31  ;;  %1814 = vmatpush1.bf16.msra.mxu0 %v3133_v47 }
  0xb8   :  { %1624 = vmatprep.subr.bf16.mxu1 %v3135_v7  ;;  %1816 = vmatprep.subr.bf16.mxu0 %v3136_v17 }
  0xbb   :  { %1626 = vmatpush1.bf16.msra.mxu1 %v3139_v42  ;;  %1818 = vmatpush1.bf16.msra.mxu0 %v3140_v24 }
  0xbc   :  { %1628 = vmatprep.subr.bf16.mxu1 %v3141_v32  ;;  %1820 = vmatprep.subr.bf16.mxu0 %v3142_v4 }
  0xbf   :  { %1630 = vmatpush1.bf16.msra.mxu1 %v3143_v35  ;;  %1822 = vmatpush1.bf16.msra.mxu0 %v3144_v20 }
  0xc0   :  { %1632 = vmatprep.subr.bf16.mxu1 %v3147_v43  ;;  %1824 = vmatprep.subr.bf16.mxu0 %v3148_v23 }
  0xc3   :  { %1634 = vmatpush1.bf16.msra.mxu1 %v3149_v21  ;;  %1826 = vmatpush1.bf16.msra.mxu0 %v3150_v12 }
  0xc4   :  { %1636 = vmatprep.subr.bf16.mxu1 %v3151_v44  ;;  %1828 = vmatprep.subr.bf16.mxu0 %v3152_v14 }
  0xc7   :  { %1638 = vmatpush1.bf16.msra.mxu1 %v3153_v29  ;;  %1830 = vmatpush1.bf16.msra.mxu0 %v3154_v22 }
  0xc8   :  { %1640 = vmatprep.subr.bf16.mxu1 %v1639_v10  ;;  %1832 = vmatprep.subr.bf16.mxu0 %v3155_v56  ;;  %v3162_v10 = vpack.c.bf16 %v3038_v54, %v3037_v58  ;;  %v3169_v54 = vld [vmem:[#allocation95_spill] sm:$0xff]  ;;  %v3170_v58 = vld [vmem:[#allocation93_spill] sm:$0xff] }
  0xcb   :  { %1642 = vmatpush1.bf16.msra.mxu1 %v3156_v63  ;;  %1834 = vmatpush1.bf16.msra.mxu0 %v3157_v26 }
  0xcc   :  { %1644 = vmatprep.subr.bf16.mxu1 %v3158_v55  ;;  %1836 = vmatprep.subr.bf16.mxu0 %v3159_v40 }
  0xcf   :  { %1646 = vmatpush1.bf16.msra.mxu1 %v3160_v37  ;;  %1838 = vmatpush1.bf16.msra.mxu0 %v3161_v6 }
  0xd0   :  { %1648 = vmatprep.subr.bf16.mxu1 %v3162_v10  ;;  %1840 = vmatprep.subr.bf16.mxu0 %v3163_v5 }
  0xd3   :  { %1650 = vmatpush1.bf16.msra.mxu1 %v3164_v28  ;;  %1842 = vmatpush1.bf16.msra.mxu0 %v3165_v9 }
  0xd4   :  { %1652 = vmatprep.subr.bf16.mxu1 %v3166_v41  ;;  %1844 = vmatprep.subr.bf16.mxu0 %v3167_v48 }
  0xd7   :  { %1654 = vmatpush1.bf16.msra.mxu1 %v3168_v49  ;;  %1846 = vmatpush1.bf16.msra.mxu0 %v3169_v54 }
  0xda   :  { %867 = vmatmul.mubr.f32.vlgmr.msra.gmra.mrb[0].mxu1 %v3170_v58  ;;  %1440 = vmatmul.mubr.f32.vlgmr.msra.gmra.mrb[0].mxu0 %v3092_v36 }
  0xdb   :  { %874 = vmatprep.mubr.f32.mxu1 %v3171_v50  ;;  %1446 = vmatprep.mubr.f32.mxu0 %v2458_v18 }
  0xde   :  { %877 = vmatmul.mubr.f32.gmra.mrb[2].mxu1 %v3172_v51  ;;  %1448 = vmatmul.mubr.f32.gmra.mrb[2].mxu0 %v2481_v52 }
 0x1ad   :  { %v868_v30 = vpop.f32.mrb[0].mxu1  ;;  %v1441_v36 = vpop.f32.mrb[0].mxu0 }
 0x1ae   :  { %v1847_v57 = vadd.f32 %v868_v30, %v101_v0  ;;  %v870_v3 = vpop.f32.mrb[1].mxu1  ;;  %v1443_v34 = vpop.f32.mrb[1].mxu0 }
 0x1af   :  { %v1849_v18 = vadd.f32 %v870_v3, %v105_v16 }
 0x1b0   :  { %v1848_v11 = vadd.f32 %v1847_v57, %v1441_v36 }
 0x1b1   :  { %v1850_v2 = vadd.f32 %v1849_v18, %v1443_v34  ;;  %v878_v60 = vpop.f32.mrb[2].mxu1  ;;  %v1449_v52 = vpop.f32.mrb[2].mxu0 }
 0x1b2   :  { %1454 = vst [vmem:[%s2775_s3] sm:$0xff] %v1848_v11  ;;  %v1851_v61 = vadd.f32 %v878_v60, %v101_v0  ;;  %v880_v8 = vpop.f32.mrb[3].mxu1  ;;  %v1451_v13 = vpop.f32.mrb[3].mxu0 }
 0x1b3   :  { %1455 = vst [vmem:[%s2775_s3 + $0x8] sm:$0xff] %v1850_v2  ;;  %v1853_v45 = vadd.f32 %v880_v8, %v105_v16 }
 0x1b4   :  { %v1852_v46 = vadd.f32 %v1851_v61, %v1449_v52 }
 0x1b5   :  { %v1854_v1 = vadd.f32 %v1853_v45, %v1451_v13 }
 0x1b6   :  { %1456 = vst [vmem:[%s2775_s3 + $0x10] sm:$0xff] %v1852_v46 }
 0x1b7   :  { %1457 = vst [vmem:[%s2775_s3 + $0x18] sm:$0xff] %v1854_v1 }
 0x1b8   :  { %1462 = vsyncpa [#allocation3], 1 }

</bundles_post_ra>
